<compile_context>
chip_gen: v7x
topology: tpu7x:2x2x1
jax: 0.10.0
libtpu: 0.0.40
codegen_flags: <defaults>
</compile_context>

<pallas_src>
import functools

import jax
import jax.numpy as jnp
from jax.experimental import pallas as pl
from jax.experimental.pallas import tpu as pltpu

LN_EPS = 1e-5  # torch.nn.LayerNorm default (timm Block default norm_layer)


# ----------------------------- kernel helpers ------------------------------

def _erf(x):
    # Abramowitz & Stegun 7.1.26 rational approximation (|err| < 1.5e-7) for
    # the exact (erf-based) GELU of torch.nn.GELU().  Kept hand-rolled because
    # it is known to lower cleanly in Mosaic.
    a1, a2, a3, a4, a5 = 0.254829592, -0.284496736, 1.421413741, -1.453152027, 1.061405429
    p = 0.3275911
    sgn = jnp.where(x >= 0.0, 1.0, -1.0)
    ax = jnp.abs(x)
    t = 1.0 / (1.0 + p * ax)
    poly = ((((a5 * t + a4) * t + a3) * t + a2) * t + a1) * t
    return sgn * (1.0 - poly * jnp.exp(-ax * ax))


def _gelu(x):
    return 0.5 * x * (1.0 + _erf(x * 0.7071067811865476))


def _layernorm(x, w, b):
    # x: (R, C) f32, w/b: (1, C)
    mu = jnp.mean(x, axis=-1, keepdims=True)
    xc = x - mu
    var = jnp.mean(xc * xc, axis=-1, keepdims=True)
    return xc * jax.lax.rsqrt(var + LN_EPS) * w + b


# ---------------------- fused transformer stack kernel ----------------------

def decoder_blocks_kernel(x_ref, pos_ref,
                          ln1w_ref, ln1b_ref, qkvw_ref, qkvb_ref,
                          projw_ref, projb_ref, ln2w_ref, ln2b_ref,
                          fc1w_ref, fc1b_ref, fc2w_ref, fc2b_ref,
                          o_ref, *, num_heads):
    layer = pl.program_id(1)

    # Layer 0: initialize the VMEM-resident carry (output block) from the
    # input tokens and fold in the positional-embedding add.
    @pl.when(layer == 0)
    def _():
        o_ref[...] = (x_ref[...] + pos_ref[...]).astype(o_ref.dtype)

    BB, T, C = o_ref.shape
    H = num_heads
    D = C // H
    scale = D ** -0.5

    x = o_ref[...].astype(jnp.float32).reshape(BB * T, C)      # (R, C), R = BB*T

    # --- Multi-head self-attention (timm Attention; qkv bias kept as zeros) ---
    xn = _layernorm(x, ln1w_ref[0], ln1b_ref[0])
    qkv = jnp.dot(xn, qkvw_ref[0], preferred_element_type=jnp.float32) + qkvb_ref[0]
    q = qkv[:, :C] * scale
    k = qkv[:, C:2 * C]
    v = qkv[:, 2 * C:]

    heads = []
    for h in range(H):                                          # static unroll over heads
        qh = q[:, h * D:(h + 1) * D].reshape(BB, T, D)
        kh = k[:, h * D:(h + 1) * D].reshape(BB, T, D)
        vh = v[:, h * D:(h + 1) * D].reshape(BB, T, D)
        s = jnp.einsum('bqd,bkd->bqk', qh, kh,
                       preferred_element_type=jnp.float32)      # (BB, T, T)
        s = s - jnp.max(s, axis=-1, keepdims=True)
        e = jnp.exp(s)
        a = e * pl.reciprocal(jnp.sum(e, axis=-1, keepdims=True), approx=True)
        oh = jnp.einsum('bqk,bkd->bqd', a, vh,
                        preferred_element_type=jnp.float32)     # (BB, T, D)
        heads.append(oh.reshape(BB * T, D))
    attn = jnp.concatenate(heads, axis=-1)                      # (R, C)
    attn = jnp.dot(attn, projw_ref[0], preferred_element_type=jnp.float32) + projb_ref[0]
    x = x + attn

    # --- MLP (fc1 -> GELU -> fc2) with residual ---
    xn = _layernorm(x, ln2w_ref[0], ln2b_ref[0])
    h1 = jnp.dot(xn, fc1w_ref[0], preferred_element_type=jnp.float32) + fc1b_ref[0]
    h1 = _gelu(h1)
    h2 = jnp.dot(h1, fc2w_ref[0], preferred_element_type=jnp.float32) + fc2b_ref[0]
    x = x + h2

    o_ref[...] = x.reshape(BB, T, C).astype(o_ref.dtype)


def _pick_block_b(B):
    # Keep batch rows packed per grid step while still exposing >=2 parallel
    # batch tiles when possible (v7x has 2 TensorCores).
    if B <= 1:
        return 1
    for bb in (8, 4, 2, 1):
        if B % bb == 0 and B // bb >= 2:
            return bb
    return 1


def decoder_transformer(x, pos, params, num_heads):
    """x: (B, T, C) tokens (pre pos-embedding), pos: (1, T, C). Returns (B, T, C)."""
    B, T, C = x.shape
    L = params["qkv_w"].shape[0]
    bb = _pick_block_b(B)
    nb = B // bb

    weight_keys = ("ln1_w", "ln1_b", "qkv_w", "qkv_b", "proj_w", "proj_b",
                   "ln2_w", "ln2_b", "fc1_w", "fc1_b", "fc2_w", "fc2_b")
    weights = [params[k] for k in weight_keys]

    def wspec(arr):
        nd = arr.ndim
        # leading dim = layer index; the rest of the (stacked) weight is one block
        return pl.BlockSpec((1,) + arr.shape[1:],
                            lambda b, l, _nd=nd: (l,) + (0,) * (_nd - 1))

    in_specs = [pl.BlockSpec((bb, T, C), lambda b, l: (b, 0, 0)),   # tokens (fetched once per b)
                pl.BlockSpec((1, T, C), lambda b, l: (0, 0, 0))]    # pos embedding (fetched once)
    in_specs += [wspec(w) for w in weights]

    return pl.pallas_call(
        functools.partial(decoder_blocks_kernel, num_heads=num_heads),
        out_shape=jax.ShapeDtypeStruct((B, T, C), x.dtype),
        grid=(nb, L),
        in_specs=in_specs,
        # Output block index constant along the layer axis -> VMEM-resident carry.
        out_specs=pl.BlockSpec((bb, T, C), lambda b, l: (b, 0, 0)),
        compiler_params=pltpu.CompilerParams(
            dimension_semantics=("parallel", "arbitrary"),
            vmem_limit_bytes=48 * 1024 * 1024),   # explicit: safe on v7x (64 MiB phys)
    )(x, pos, *weights)


# ------------------------- prediction head kernel ---------------------------

def linear_kernel(x_ref, w_ref, b_ref, o_ref):
    o_ref[...] = (jnp.dot(x_ref[...], w_ref[...], preferred_element_type=jnp.float32)
                  + b_ref[...]).astype(o_ref.dtype)


def linear(x2d, w, b, *, block_m=256):
    """Row-tiled linear with lane-dense (multiple-of-128) padded output columns."""
    M, C = x2d.shape
    P = w.shape[1]
    Pp = ((P + 127) // 128) * 128
    if Pp != P:
        w = jnp.pad(w, ((0, 0), (0, Pp - P)))
        b = jnp.pad(b, ((0, Pp - P),))
    bm = min(block_m, M)
    out = pl.pallas_call(
        linear_kernel,
        out_shape=jax.ShapeDtypeStruct((M, Pp), x2d.dtype),
        grid=(pl.cdiv(M, bm),),
        in_specs=[pl.BlockSpec((bm, C), lambda i: (i, 0)),
                  pl.BlockSpec((C, Pp), lambda i: (0, 0)),
                  pl.BlockSpec((1, Pp), lambda i: (0, 0))],
        out_specs=pl.BlockSpec((bm, Pp), lambda i: (i, 0)),
        compiler_params=pltpu.CompilerParams(dimension_semantics=("parallel",)),
    )(x2d, w, b.reshape(1, Pp))
    return out[:, :P] if Pp != P else out


# ------------------------------ JAX glue ------------------------------------

def patch2img_b(patches, image_size, patch_size):
    # (B, N, P) version of Rearrange('(h w) b (c p1 p2) -> b c (h p1) (w p2)')
    hp = image_size // patch_size
    B, N, P = patches.shape
    c = P // (patch_size * patch_size)
    x = patches.reshape(B, hp, hp, c, patch_size, patch_size)
    x = jnp.transpose(x, (0, 3, 1, 4, 2, 5))
    return x.reshape(B, c, hp * patch_size, hp * patch_size)


def mae_decoder_forward(features, backward_indexes, params, *,
                        image_size, patch_size, num_heads):
    """features: (T_vis, B, C), backward_indexes: (num_patches, B) int32."""
    T_vis, B, C = features.shape

    # backward_indexes = cat([0, backward_indexes + 1])
    bi = jnp.concatenate(
        [jnp.zeros((1, B), backward_indexes.dtype), backward_indexes + 1], axis=0)   # (N+1, B)
    N1 = bi.shape[0]
    bi_b = jnp.transpose(bi, (1, 0))                                                 # (B, N+1)

    # append mask tokens and un-shuffle, all in (B, T, C) layout (no full-size
    # transposes of the activation tensor).
    feats = jnp.transpose(features, (1, 0, 2))                                       # (B, T_vis, C)
    mask_tok = jnp.broadcast_to(params["mask_token"], (B, N1 - T_vis, C))
    feats = jnp.concatenate([feats, mask_tok], axis=1)                               # (B, N+1, C)
    idx = jnp.broadcast_to(bi_b[:, :, None], (B, N1, C))
    feats = jnp.take_along_axis(feats, idx, axis=1)       # output[b,t,c] = feats[b, bi[t,b], c]

    # fused transformer stack (pos-embedding add happens inside, at layer 0)
    pos = jnp.transpose(params["pos_embedding"], (1, 0, 2))                          # (1, N+1, C)
    x = decoder_transformer(feats, pos, params, num_heads)                           # (B, N+1, C)

    x = x[:, 1:, :]                                                                  # drop cls token
    N = N1 - 1

    # prediction head (row-tiled Pallas matmul, lane-dense padded output)
    patches = linear(x.reshape(B * N, C), params["head_w"], params["head_b"])
    P = patches.shape[-1]
    patches = patches.reshape(B, N, P)

    # mask: zeros, rows >= T_vis set to 1, gathered with the original indexes
    mask_base = jnp.broadcast_to(
        (jnp.arange(N)[None, :] >= T_vis).astype(patches.dtype), (B, N))
    mask = jnp.take_along_axis(mask_base, bi_b[:, 1:] - 1, axis=1)                   # (B, N)
    mask = jnp.broadcast_to(mask[:, :, None], (B, N, P))

    img = patch2img_b(patches, image_size, patch_size)
    mask_img = patch2img_b(mask, image_size, patch_size)
    return img, mask_img


# ---------------------------- parameter init --------------------------------

def init_params(key, *, embed_dim, num_layer, patch_size, image_size):
    C, L = embed_dim, num_layer
    num_patches = (image_size // patch_size) ** 2
    P = 3 * patch_size ** 2
    keys = iter(jax.random.split(key, 8))

    def normal(shape, std=0.02):
        return (std * jax.random.normal(next(keys), shape)).astype(jnp.float32)

    # Per-layer weights stacked with a leading layer dim (for the fused kernel).
    return {
        "mask_token": normal((1, 1, C)),                  # trunc_normal std=0.02 (approx)
        "pos_embedding": normal((num_patches + 1, 1, C)),
        "head_w": normal((C, P)),
        "head_b": jnp.zeros((P,), jnp.float32),
        "ln1_w": jnp.ones((L, 1, C), jnp.float32),
        "ln1_b": jnp.zeros((L, 1, C), jnp.float32),
        "qkv_w": normal((L, C, 3 * C)),
        "qkv_b": jnp.zeros((L, 1, 3 * C), jnp.float32),   # timm qkv_bias=False -> zeros
        "proj_w": normal((L, C, C)),
        "proj_b": jnp.zeros((L, 1, C), jnp.float32),
        "ln2_w": jnp.ones((L, 1, C), jnp.float32),
        "ln2_b": jnp.zeros((L, 1, C), jnp.float32),
        "fc1_w": normal((L, C, 4 * C)),
        "fc1_b": jnp.zeros((L, 1, 4 * C), jnp.float32),
        "fc2_w": normal((L, 4 * C, C)),
        "fc2_b": jnp.zeros((L, 1, C), jnp.float32),
    }


# --------------------------------- main --------------------------------------

if __name__ == "__main__":
    image_size, patch_size = 32, 8
    embed_dim, num_layer, num_head = 32, 2, 2
    B = 2
    num_patches = (image_size // patch_size) ** 2   # 16
    T_vis = 5                                       # cls token + 4 visible patch tokens

    key = jax.random.PRNGKey(0)
    k_feat, k_idx, k_par = jax.random.split(key, 3)

    features = (0.1 * jax.random.normal(k_feat, (T_vis, B, embed_dim))).astype(jnp.float32)
    # per-batch-column permutation of patch indices (backward shuffle indexes)
    cols = [jax.random.permutation(jax.random.fold_in(k_idx, b), num_patches) for b in range(B)]
    backward_indexes = jnp.stack(cols, axis=1).astype(jnp.int32)   # (num_patches, B)

    params = init_params(k_par, embed_dim=embed_dim, num_layer=num_layer,
                         patch_size=patch_size, image_size=image_size)

    img, mask = mae_decoder_forward(features, backward_indexes, params,
                                    image_size=image_size, patch_size=patch_size,
                                    num_heads=num_head)
    (img, mask) = jax.block_until_ready((img, mask))

    assert img.shape == (B, 3, image_size, image_size), img.shape
    assert mask.shape == (B, 3, image_size, image_size), mask.shape
    assert img.dtype == jnp.float32 and mask.dtype == jnp.float32

    print("KERNEL_OK")
</pallas_src>

<mosaic_0001>
module attributes {stable_mosaic.version = 11 : i64} {
  func.func @decoder_blocks_kernel(%arg0: i32, %arg1: i32, %arg2: memref<1x17x32xf32, #tpu.memory_space<vmem>>, %arg3: memref<1x17x32xf32, #tpu.memory_space<vmem>>, %arg4: memref<1x1x32xf32, #tpu.memory_space<vmem>>, %arg5: memref<1x1x32xf32, #tpu.memory_space<vmem>>, %arg6: memref<1x32x96xf32, #tpu.memory_space<vmem>>, %arg7: memref<1x1x96xf32, #tpu.memory_space<vmem>>, %arg8: memref<1x32x32xf32, #tpu.memory_space<vmem>>, %arg9: memref<1x1x32xf32, #tpu.memory_space<vmem>>, %arg10: memref<1x1x32xf32, #tpu.memory_space<vmem>>, %arg11: memref<1x1x32xf32, #tpu.memory_space<vmem>>, %arg12: memref<1x32x128xf32, #tpu.memory_space<vmem>>, %arg13: memref<1x1x128xf32, #tpu.memory_space<vmem>>, %arg14: memref<1x128x32xf32, #tpu.memory_space<vmem>>, %arg15: memref<1x1x32xf32, #tpu.memory_space<vmem>>, %arg16: memref<1x17x32xf32, #tpu.memory_space<vmem>>) attributes {dimension_semantics = [#tpu.dimension_semantics<parallel>, #tpu.dimension_semantics<arbitrary>], iteration_bounds = array<i64: 2, 2>, scalar_prefetch = 0 : i64, scratch_operands = 0 : i64, tpu.core_type = #tpu.core_type<tc>, window_params = [{transform_indices = @transform_0, window_bounds = array<i64: 1, 17, 32>}, {pipeline_mode = #tpu.pipeline_mode<synchronous>, transform_indices = @transform_1, window_bounds = array<i64: 1, 17, 32>}, {transform_indices = @transform_2, window_bounds = array<i64: 1, 1, 32>}, {transform_indices = @transform_3, window_bounds = array<i64: 1, 1, 32>}, {transform_indices = @transform_4, window_bounds = array<i64: 1, 32, 96>}, {transform_indices = @transform_5, window_bounds = array<i64: 1, 1, 96>}, {transform_indices = @transform_6, window_bounds = array<i64: 1, 32, 32>}, {transform_indices = @transform_7, window_bounds = array<i64: 1, 1, 32>}, {transform_indices = @transform_8, window_bounds = array<i64: 1, 1, 32>}, {transform_indices = @transform_9, window_bounds = array<i64: 1, 1, 32>}, {transform_indices = @transform_10, window_bounds = array<i64: 1, 32, 128>}, {transform_indices = @transform_11, window_bounds = array<i64: 1, 1, 128>}, {transform_indices = @transform_12, window_bounds = array<i64: 1, 128, 32>}, {transform_indices = @transform_13, window_bounds = array<i64: 1, 1, 32>}, {transform_indices = @transform_14, window_bounds = array<i64: 1, 17, 32>}]} {
    %c0_i32 = arith.constant 0 : i32
    %0 = arith.cmpi eq, %arg1, %c0_i32 : i32
    %1 = arith.extui %0 : i1 to i32
    %c0_i32_0 = arith.constant 0 : i32
    %2 = arith.cmpi ne, %1, %c0_i32_0 : i32
    scf.if %2 {
      %c0_80 = arith.constant 0 : index
      %c0_81 = arith.constant 0 : index
      %c0_82 = arith.constant 0 : index
      %170 = vector.load %arg2[%c0_80, %c0_81, %c0_82] : memref<1x17x32xf32, #tpu.memory_space<vmem>>, vector<1x17x32xf32>
      %c0_83 = arith.constant 0 : index
      %c0_84 = arith.constant 0 : index
      %c0_85 = arith.constant 0 : index
      %171 = vector.load %arg3[%c0_83, %c0_84, %c0_85] : memref<1x17x32xf32, #tpu.memory_space<vmem>>, vector<1x17x32xf32>
      %172 = arith.addf %170, %171 : vector<1x17x32xf32>
      %c0_86 = arith.constant 0 : index
      %c0_87 = arith.constant 0 : index
      %c0_88 = arith.constant 0 : index
      %173 = vector.load %arg16[%c0_86, %c0_87, %c0_88] : memref<1x17x32xf32, #tpu.memory_space<vmem>>, vector<1x17x32xf32>
      tpu.vector_store %arg16[%c0_86, %c0_87, %c0_88], %172 {strides = array<i32>} : memref<1x17x32xf32, #tpu.memory_space<vmem>>, vector<1x17x32xf32>,
    } else {
    }
    %c0 = arith.constant 0 : index
    %c0_1 = arith.constant 0 : index
    %c0_2 = arith.constant 0 : index
    %3 = vector.load %arg16[%c0, %c0_1, %c0_2] : memref<1x17x32xf32, #tpu.memory_space<vmem>>, vector<1x17x32xf32>
    %4 = vector.shape_cast %3 : vector<1x17x32xf32> to vector<17x32xf32>
    %c0_3 = arith.constant 0 : index
    %c0_4 = arith.constant 0 : index
    %c0_5 = arith.constant 0 : index
    %5 = vector.load %arg4[%c0_3, %c0_4, %c0_5] : memref<1x1x32xf32, #tpu.memory_space<vmem>>, vector<1x1x32xf32>
    %6 = vector.shape_cast %5 : vector<1x1x32xf32> to vector<1x32xf32>
    %c0_6 = arith.constant 0 : index
    %c0_7 = arith.constant 0 : index
    %c0_8 = arith.constant 0 : index
    %7 = vector.load %arg5[%c0_6, %c0_7, %c0_8] : memref<1x1x32xf32, #tpu.memory_space<vmem>>, vector<1x1x32xf32>
    %8 = vector.shape_cast %7 : vector<1x1x32xf32> to vector<1x32xf32>
    %cst = arith.constant dense<0.000000e+00> : vector<17xf32>
    %9 = vector.multi_reduction <add>, %4, %cst [1] : vector<17x32xf32> to vector<17xf32>
    %10 = vector.shape_cast %9 : vector<17xf32> to vector<17x1xf32>
    %cst_9 = arith.constant 3.200000e+01 : f32
    %11 = vector.broadcast %cst_9 : f32 to vector<17x1xf32>
    %12 = arith.divf %10, %11 : vector<17x1xf32>
    %13 = vector.broadcast %12 : vector<17x1xf32> to vector<17x32xf32>
    %14 = arith.subf %4, %13 : vector<17x32xf32>
    %15 = arith.mulf %14, %14 : vector<17x32xf32>
    %cst_10 = arith.constant dense<0.000000e+00> : vector<17xf32>
    %16 = vector.multi_reduction <add>, %15, %cst_10 [1] : vector<17x32xf32> to vector<17xf32>
    %17 = vector.shape_cast %16 : vector<17xf32> to vector<17x1xf32>
    %cst_11 = arith.constant 3.200000e+01 : f32
    %18 = vector.broadcast %cst_11 : f32 to vector<17x1xf32>
    %19 = arith.divf %17, %18 : vector<17x1xf32>
    %cst_12 = arith.constant 9.99999974E-6 : f32
    %20 = vector.broadcast %cst_12 : f32 to vector<17x1xf32>
    %21 = arith.addf %19, %20 : vector<17x1xf32>
    %22 = math.rsqrt %21 : vector<17x1xf32>
    %23 = vector.broadcast %22 : vector<17x1xf32> to vector<17x32xf32>
    %24 = arith.mulf %14, %23 : vector<17x32xf32>
    %25 = vector.broadcast %6 : vector<1x32xf32> to vector<17x32xf32>
    %26 = arith.mulf %24, %25 : vector<17x32xf32>
    %27 = vector.broadcast %8 : vector<1x32xf32> to vector<17x32xf32>
    %28 = arith.addf %26, %27 : vector<17x32xf32>
    %c0_13 = arith.constant 0 : index
    %c0_14 = arith.constant 0 : index
    %c0_15 = arith.constant 0 : index
    %29 = vector.load %arg6[%c0_13, %c0_14, %c0_15] : memref<1x32x96xf32, #tpu.memory_space<vmem>>, vector<1x32x96xf32>
    %30 = vector.shape_cast %29 : vector<1x32x96xf32> to vector<32x96xf32>
    %cst_16 = arith.constant dense<0.000000e+00> : vector<17x96xf32>
    %31 = tpu.matmul %28, %30, %cst_16 {dimension_numbers = #tpu.dot_dimension_numbers<[1], [0], [0], [1], [0, 0, 1, 1], [], []>} : vector<17x32xf32>, vector<32x96xf32>, vector<17x96xf32> -> vector<17x96xf32>
    %c0_17 = arith.constant 0 : index
    %c0_18 = arith.constant 0 : index
    %c0_19 = arith.constant 0 : index
    %32 = vector.load %arg7[%c0_17, %c0_18, %c0_19] : memref<1x1x96xf32, #tpu.memory_space<vmem>>, vector<1x1x96xf32>
    %33 = vector.shape_cast %32 : vector<1x1x96xf32> to vector<1x96xf32>
    %34 = vector.broadcast %33 : vector<1x96xf32> to vector<17x96xf32>
    %35 = arith.addf %31, %34 : vector<17x96xf32>
    %36 = vector.extract_strided_slice %35 {offsets = [0, 0], sizes = [17, 32], strides = [1, 1]} : vector<17x96xf32> to vector<17x32xf32>
    %cst_20 = arith.constant 2.500000e-01 : f32
    %37 = vector.broadcast %cst_20 : f32 to vector<17x32xf32>
    %38 = arith.mulf %36, %37 : vector<17x32xf32>
    %39 = vector.extract_strided_slice %35 {offsets = [0, 32], sizes = [17, 32], strides = [1, 1]} : vector<17x96xf32> to vector<17x32xf32>
    %40 = vector.extract_strided_slice %35 {offsets = [0, 64], sizes = [17, 32], strides = [1, 1]} : vector<17x96xf32> to vector<17x32xf32>
    %41 = vector.extract_strided_slice %38 {offsets = [0, 0], sizes = [17, 16], strides = [1, 1]} : vector<17x32xf32> to vector<17x16xf32>
    %42 = vector.shape_cast %41 : vector<17x16xf32> to vector<1x17x16xf32>
    %43 = vector.extract_strided_slice %39 {offsets = [0, 0], sizes = [17, 16], strides = [1, 1]} : vector<17x32xf32> to vector<17x16xf32>
    %44 = vector.shape_cast %43 : vector<17x16xf32> to vector<1x17x16xf32>
    %45 = vector.extract_strided_slice %40 {offsets = [0, 0], sizes = [17, 16], strides = [1, 1]} : vector<17x32xf32> to vector<17x16xf32>
    %46 = vector.shape_cast %45 : vector<17x16xf32> to vector<1x17x16xf32>
    "tpu.trace_start"() <{level = 10 : i32, message = "bqd,bkd->bqk"}> : () -> ()
    %cst_21 = arith.constant dense<0.000000e+00> : vector<1x17x17xf32>
    %47 = tpu.matmul %42, %44, %cst_21 {dimension_numbers = #tpu.dot_dimension_numbers<[2], [2], [1], [1], [0, 0, 0, 1, 1, 1], [0], [0]>} : vector<1x17x16xf32>, vector<1x17x16xf32>, vector<1x17x17xf32> -> vector<1x17x17xf32>
    "tpu.trace_stop"() : () -> ()
    %cst_22 = arith.constant dense<0xFF800000> : vector<1x17xf32>
    %48 = vector.multi_reduction <maximumf>, %47, %cst_22 [2] : vector<1x17x17xf32> to vector<1x17xf32>
    %49 = vector.shape_cast %48 : vector<1x17xf32> to vector<1x17x1xf32>
    %50 = vector.broadcast %49 : vector<1x17x1xf32> to vector<1x17x17xf32>
    %51 = arith.subf %47, %50 : vector<1x17x17xf32>
    %52 = math.exp %51 : vector<1x17x17xf32>
    %cst_23 = arith.constant dense<0.000000e+00> : vector<1x17xf32>
    %53 = vector.multi_reduction <add>, %52, %cst_23 [2] : vector<1x17x17xf32> to vector<1x17xf32>
    %54 = vector.shape_cast %53 : vector<1x17xf32> to vector<1x17x1xf32>
    %55 = tpu.reciprocal %54 {approx = true} : vector<1x17x1xf32> -> vector<1x17x1xf32>
    %56 = vector.broadcast %55 : vector<1x17x1xf32> to vector<1x17x17xf32>
    %57 = arith.mulf %52, %56 : vector<1x17x17xf32>
    "tpu.trace_start"() <{level = 10 : i32, message = "bqk,bkd->bqd"}> : () -> ()
    %cst_24 = arith.constant dense<0.000000e+00> : vector<1x17x16xf32>
    %58 = tpu.matmul %57, %46, %cst_24 {dimension_numbers = #tpu.dot_dimension_numbers<[2], [1], [1], [2], [0, 0, 0, 1, 1, 2], [0], [0]>} : vector<1x17x17xf32>, vector<1x17x16xf32>, vector<1x17x16xf32> -> vector<1x17x16xf32>
    "tpu.trace_stop"() : () -> ()
    %59 = vector.shape_cast %58 : vector<1x17x16xf32> to vector<17x16xf32>
    %60 = vector.extract_strided_slice %38 {offsets = [0, 16], sizes = [17, 16], strides = [1, 1]} : vector<17x32xf32> to vector<17x16xf32>
    %61 = vector.shape_cast %60 : vector<17x16xf32> to vector<1x17x16xf32>
    %62 = vector.extract_strided_slice %39 {offsets = [0, 16], sizes = [17, 16], strides = [1, 1]} : vector<17x32xf32> to vector<17x16xf32>
    %63 = vector.shape_cast %62 : vector<17x16xf32> to vector<1x17x16xf32>
    %64 = vector.extract_strided_slice %40 {offsets = [0, 16], sizes = [17, 16], strides = [1, 1]} : vector<17x32xf32> to vector<17x16xf32>
    %65 = vector.shape_cast %64 : vector<17x16xf32> to vector<1x17x16xf32>
    "tpu.trace_start"() <{level = 10 : i32, message = "bqd,bkd->bqk"}> : () -> ()
    %cst_25 = arith.constant dense<0.000000e+00> : vector<1x17x17xf32>
    %66 = tpu.matmul %61, %63, %cst_25 {dimension_numbers = #tpu.dot_dimension_numbers<[2], [2], [1], [1], [0, 0, 0, 1, 1, 1], [0], [0]>} : vector<1x17x16xf32>, vector<1x17x16xf32>, vector<1x17x17xf32> -> vector<1x17x17xf32>
    "tpu.trace_stop"() : () -> ()
    %cst_26 = arith.constant dense<0xFF800000> : vector<1x17xf32>
    %67 = vector.multi_reduction <maximumf>, %66, %cst_26 [2] : vector<1x17x17xf32> to vector<1x17xf32>
    %68 = vector.shape_cast %67 : vector<1x17xf32> to vector<1x17x1xf32>
    %69 = vector.broadcast %68 : vector<1x17x1xf32> to vector<1x17x17xf32>
    %70 = arith.subf %66, %69 : vector<1x17x17xf32>
    %71 = math.exp %70 : vector<1x17x17xf32>
    %cst_27 = arith.constant dense<0.000000e+00> : vector<1x17xf32>
    %72 = vector.multi_reduction <add>, %71, %cst_27 [2] : vector<1x17x17xf32> to vector<1x17xf32>
    %73 = vector.shape_cast %72 : vector<1x17xf32> to vector<1x17x1xf32>
    %74 = tpu.reciprocal %73 {approx = true} : vector<1x17x1xf32> -> vector<1x17x1xf32>
    %75 = vector.broadcast %74 : vector<1x17x1xf32> to vector<1x17x17xf32>
    %76 = arith.mulf %71, %75 : vector<1x17x17xf32>
    "tpu.trace_start"() <{level = 10 : i32, message = "bqk,bkd->bqd"}> : () -> ()
    %cst_28 = arith.constant dense<0.000000e+00> : vector<1x17x16xf32>
    %77 = tpu.matmul %76, %65, %cst_28 {dimension_numbers = #tpu.dot_dimension_numbers<[2], [1], [1], [2], [0, 0, 0, 1, 1, 2], [0], [0]>} : vector<1x17x17xf32>, vector<1x17x16xf32>, vector<1x17x16xf32> -> vector<1x17x16xf32>
    "tpu.trace_stop"() : () -> ()
    %78 = vector.shape_cast %77 : vector<1x17x16xf32> to vector<17x16xf32>
    %79 = tpu.concatenate %59, %78 in 1 : vector<17x16xf32>, vector<17x16xf32> -> vector<17x32xf32>
    %c0_29 = arith.constant 0 : index
    %c0_30 = arith.constant 0 : index
    %c0_31 = arith.constant 0 : index
    %80 = vector.load %arg8[%c0_29, %c0_30, %c0_31] : memref<1x32x32xf32, #tpu.memory_space<vmem>>, vector<1x32x32xf32>
    %81 = vector.shape_cast %80 : vector<1x32x32xf32> to vector<32x32xf32>
    %cst_32 = arith.constant dense<0.000000e+00> : vector<17x32xf32>
    %82 = tpu.matmul %79, %81, %cst_32 {dimension_numbers = #tpu.dot_dimension_numbers<[1], [0], [0], [1], [0, 0, 1, 1], [], []>} : vector<17x32xf32>, vector<32x32xf32>, vector<17x32xf32> -> vector<17x32xf32>
    %c0_33 = arith.constant 0 : index
    %c0_34 = arith.constant 0 : index
    %c0_35 = arith.constant 0 : index
    %83 = vector.load %arg9[%c0_33, %c0_34, %c0_35] : memref<1x1x32xf32, #tpu.memory_space<vmem>>, vector<1x1x32xf32>
    %84 = vector.shape_cast %83 : vector<1x1x32xf32> to vector<1x32xf32>
    %85 = vector.broadcast %84 : vector<1x32xf32> to vector<17x32xf32>
    %86 = arith.addf %82, %85 : vector<17x32xf32>
    %87 = arith.addf %4, %86 : vector<17x32xf32>
    %c0_36 = arith.constant 0 : index
    %c0_37 = arith.constant 0 : index
    %c0_38 = arith.constant 0 : index
    %88 = vector.load %arg10[%c0_36, %c0_37, %c0_38] : memref<1x1x32xf32, #tpu.memory_space<vmem>>, vector<1x1x32xf32>
    %89 = vector.shape_cast %88 : vector<1x1x32xf32> to vector<1x32xf32>
    %c0_39 = arith.constant 0 : index
    %c0_40 = arith.constant 0 : index
    %c0_41 = arith.constant 0 : index
    %90 = vector.load %arg11[%c0_39, %c0_40, %c0_41] : memref<1x1x32xf32, #tpu.memory_space<vmem>>, vector<1x1x32xf32>
    %91 = vector.shape_cast %90 : vector<1x1x32xf32> to vector<1x32xf32>
    %cst_42 = arith.constant dense<0.000000e+00> : vector<17xf32>
    %92 = vector.multi_reduction <add>, %87, %cst_42 [1] : vector<17x32xf32> to vector<17xf32>
    %93 = vector.shape_cast %92 : vector<17xf32> to vector<17x1xf32>
    %cst_43 = arith.constant 3.200000e+01 : f32
    %94 = vector.broadcast %cst_43 : f32 to vector<17x1xf32>
    %95 = arith.divf %93, %94 : vector<17x1xf32>
    %96 = vector.broadcast %95 : vector<17x1xf32> to vector<17x32xf32>
    %97 = arith.subf %87, %96 : vector<17x32xf32>
    %98 = arith.mulf %97, %97 : vector<17x32xf32>
    %cst_44 = arith.constant dense<0.000000e+00> : vector<17xf32>
    %99 = vector.multi_reduction <add>, %98, %cst_44 [1] : vector<17x32xf32> to vector<17xf32>
    %100 = vector.shape_cast %99 : vector<17xf32> to vector<17x1xf32>
    %cst_45 = arith.constant 3.200000e+01 : f32
    %101 = vector.broadcast %cst_45 : f32 to vector<17x1xf32>
    %102 = arith.divf %100, %101 : vector<17x1xf32>
    %cst_46 = arith.constant 9.99999974E-6 : f32
    %103 = vector.broadcast %cst_46 : f32 to vector<17x1xf32>
    %104 = arith.addf %102, %103 : vector<17x1xf32>
    %105 = math.rsqrt %104 : vector<17x1xf32>
    %106 = vector.broadcast %105 : vector<17x1xf32> to vector<17x32xf32>
    %107 = arith.mulf %97, %106 : vector<17x32xf32>
    %108 = vector.broadcast %89 : vector<1x32xf32> to vector<17x32xf32>
    %109 = arith.mulf %107, %108 : vector<17x32xf32>
    %110 = vector.broadcast %91 : vector<1x32xf32> to vector<17x32xf32>
    %111 = arith.addf %109, %110 : vector<17x32xf32>
    %c0_47 = arith.constant 0 : index
    %c0_48 = arith.constant 0 : index
    %c0_49 = arith.constant 0 : index
    %112 = vector.load %arg12[%c0_47, %c0_48, %c0_49] : memref<1x32x128xf32, #tpu.memory_space<vmem>>, vector<1x32x128xf32>
    %113 = vector.shape_cast %112 : vector<1x32x128xf32> to vector<32x128xf32>
    %cst_50 = arith.constant dense<0.000000e+00> : vector<17x128xf32>
    %114 = tpu.matmul %111, %113, %cst_50 {dimension_numbers = #tpu.dot_dimension_numbers<[1], [0], [0], [1], [0, 0, 1, 1], [], []>} : vector<17x32xf32>, vector<32x128xf32>, vector<17x128xf32> -> vector<17x128xf32>
    %c0_51 = arith.constant 0 : index
    %c0_52 = arith.constant 0 : index
    %c0_53 = arith.constant 0 : index
    %115 = vector.load %arg13[%c0_51, %c0_52, %c0_53] : memref<1x1x128xf32, #tpu.memory_space<vmem>>, vector<1x1x128xf32>
    %116 = vector.shape_cast %115 : vector<1x1x128xf32> to vector<1x128xf32>
    %117 = vector.broadcast %116 : vector<1x128xf32> to vector<17x128xf32>
    %118 = arith.addf %114, %117 : vector<17x128xf32>
    %cst_54 = arith.constant 5.000000e-01 : f32
    %119 = vector.broadcast %cst_54 : f32 to vector<17x128xf32>
    %120 = arith.mulf %119, %118 : vector<17x128xf32>
    %cst_55 = arith.constant 0.707106769 : f32
    %121 = vector.broadcast %cst_55 : f32 to vector<17x128xf32>
    %122 = arith.mulf %118, %121 : vector<17x128xf32>
    %cst_56 = arith.constant 0.000000e+00 : f32
    %123 = vector.broadcast %cst_56 : f32 to vector<17x128xf32>
    %124 = arith.cmpf oge, %122, %123 : vector<17x128xf32>
    %cst_57 = arith.constant 1.000000e+00 : f32
    %cst_58 = arith.constant -1.000000e+00 : f32
    %125 = vector.broadcast %cst_57 : f32 to vector<17x128xf32>
    %126 = vector.broadcast %cst_58 : f32 to vector<17x128xf32>
    %127 = arith.select %124, %125, %126 : vector<17x128xi1>, vector<17x128xf32>
    %128 = math.absf %122 : vector<17x128xf32>
    %cst_59 = arith.constant 0.327591091 : f32
    %129 = vector.broadcast %cst_59 : f32 to vector<17x128xf32>
    %130 = arith.mulf %129, %128 : vector<17x128xf32>
    %cst_60 = arith.constant 1.000000e+00 : f32
    %131 = vector.broadcast %cst_60 : f32 to vector<17x128xf32>
    %132 = arith.addf %131, %130 : vector<17x128xf32>
    %cst_61 = arith.constant 1.000000e+00 : f32
    %133 = vector.broadcast %cst_61 : f32 to vector<17x128xf32>
    %134 = arith.divf %133, %132 : vector<17x128xf32>
    %cst_62 = arith.constant 1.06140542 : f32
    %135 = vector.broadcast %cst_62 : f32 to vector<17x128xf32>
    %136 = arith.mulf %135, %134 : vector<17x128xf32>
    %cst_63 = arith.constant -1.45315206 : f32
    %137 = vector.broadcast %cst_63 : f32 to vector<17x128xf32>
    %138 = arith.addf %136, %137 : vector<17x128xf32>
    %139 = arith.mulf %138, %134 : vector<17x128xf32>
    %cst_64 = arith.constant 1.42141378 : f32
    %140 = vector.broadcast %cst_64 : f32 to vector<17x128xf32>
    %141 = arith.addf %139, %140 : vector<17x128xf32>
    %142 = arith.mulf %141, %134 : vector<17x128xf32>
    %cst_65 = arith.constant -0.284496725 : f32
    %143 = vector.broadcast %cst_65 : f32 to vector<17x128xf32>
    %144 = arith.addf %142, %143 : vector<17x128xf32>
    %145 = arith.mulf %144, %134 : vector<17x128xf32>
    %cst_66 = arith.constant 0.254829586 : f32
    %146 = vector.broadcast %cst_66 : f32 to vector<17x128xf32>
    %147 = arith.addf %145, %146 : vector<17x128xf32>
    %148 = arith.mulf %147, %134 : vector<17x128xf32>
    %cst_67 = arith.constant 0.000000e+00 : f32
    %149 = vector.broadcast %cst_67 : f32 to vector<17x128xf32>
    %150 = arith.subf %149, %128 : vector<17x128xf32>
    %151 = arith.mulf %150, %128 : vector<17x128xf32>
    %152 = math.exp %151 : vector<17x128xf32>
    %153 = arith.mulf %148, %152 : vector<17x128xf32>
    %cst_68 = arith.constant 1.000000e+00 : f32
    %154 = vector.broadcast %cst_68 : f32 to vector<17x128xf32>
    %155 = arith.subf %154, %153 : vector<17x128xf32>
    %156 = arith.mulf %127, %155 : vector<17x128xf32>
    %cst_69 = arith.constant 1.000000e+00 : f32
    %157 = vector.broadcast %cst_69 : f32 to vector<17x128xf32>
    %158 = arith.addf %157, %156 : vector<17x128xf32>
    %159 = arith.mulf %120, %158 : vector<17x128xf32>
    %c0_70 = arith.constant 0 : index
    %c0_71 = arith.constant 0 : index
    %c0_72 = arith.constant 0 : index
    %160 = vector.load %arg14[%c0_70, %c0_71, %c0_72] : memref<1x128x32xf32, #tpu.memory_space<vmem>>, vector<1x128x32xf32>
    %161 = vector.shape_cast %160 : vector<1x128x32xf32> to vector<128x32xf32>
    %cst_73 = arith.constant dense<0.000000e+00> : vector<17x32xf32>
    %162 = tpu.matmul %159, %161, %cst_73 {dimension_numbers = #tpu.dot_dimension_numbers<[1], [0], [0], [1], [0, 0, 1, 1], [], []>} : vector<17x128xf32>, vector<128x32xf32>, vector<17x32xf32> -> vector<17x32xf32>
    %c0_74 = arith.constant 0 : index
    %c0_75 = arith.constant 0 : index
    %c0_76 = arith.constant 0 : index
    %163 = vector.load %arg15[%c0_74, %c0_75, %c0_76] : memref<1x1x32xf32, #tpu.memory_space<vmem>>, vector<1x1x32xf32>
    %164 = vector.shape_cast %163 : vector<1x1x32xf32> to vector<1x32xf32>
    %165 = vector.broadcast %164 : vector<1x32xf32> to vector<17x32xf32>
    %166 = arith.addf %162, %165 : vector<17x32xf32>
    %167 = arith.addf %87, %166 : vector<17x32xf32>
    %168 = vector.shape_cast %167 : vector<17x32xf32> to vector<1x17x32xf32>
    %c0_77 = arith.constant 0 : index
    %c0_78 = arith.constant 0 : index
    %c0_79 = arith.constant 0 : index
    %169 = vector.load %arg16[%c0_77, %c0_78, %c0_79] : memref<1x17x32xf32, #tpu.memory_space<vmem>>, vector<1x17x32xf32>
    tpu.vector_store %arg16[%c0_77, %c0_78, %c0_79], %168 {strides = array<i32>} : memref<1x17x32xf32, #tpu.memory_space<vmem>>, vector<1x17x32xf32>,
    return
  }
  func.func @transform_0(%arg0: i32, %arg1: i32) -> (i32, i32, i32) {
    %c0_i32 = arith.constant 0 : i32
    %c0_i32_0 = arith.constant 0 : i32
    %c0_i32_1 = arith.constant 0 : i32
    return %arg0, %c0_i32, %c0_i32_0 : i32, i32, i32
  }
  func.func @transform_1(%arg0: i32, %arg1: i32) -> (i32, i32, i32) {
    %c0_i32 = arith.constant 0 : i32
    %c0_i32_0 = arith.constant 0 : i32
    %c0_i32_1 = arith.constant 0 : i32
    %c0_i32_2 = arith.constant 0 : i32
    return %c0_i32, %c0_i32_0, %c0_i32_1 : i32, i32, i32
  }
  func.func @transform_2(%arg0: i32, %arg1: i32) -> (i32, i32, i32) {
    %c0_i32 = arith.constant 0 : i32
    %c0_i32_0 = arith.constant 0 : i32
    %c0_i32_1 = arith.constant 0 : i32
    return %arg1, %c0_i32, %c0_i32_0 : i32, i32, i32
  }
  func.func @transform_3(%arg0: i32, %arg1: i32) -> (i32, i32, i32) {
    %c0_i32 = arith.constant 0 : i32
    %c0_i32_0 = arith.constant 0 : i32
    %c0_i32_1 = arith.constant 0 : i32
    return %arg1, %c0_i32, %c0_i32_0 : i32, i32, i32
  }
  func.func @transform_4(%arg0: i32, %arg1: i32) -> (i32, i32, i32) {
    %c0_i32 = arith.constant 0 : i32
    %c0_i32_0 = arith.constant 0 : i32
    %c0_i32_1 = arith.constant 0 : i32
    return %arg1, %c0_i32, %c0_i32_0 : i32, i32, i32
  }
  func.func @transform_5(%arg0: i32, %arg1: i32) -> (i32, i32, i32) {
    %c0_i32 = arith.constant 0 : i32
    %c0_i32_0 = arith.constant 0 : i32
    %c0_i32_1 = arith.constant 0 : i32
    return %arg1, %c0_i32, %c0_i32_0 : i32, i32, i32
  }
  func.func @transform_6(%arg0: i32, %arg1: i32) -> (i32, i32, i32) {
    %c0_i32 = arith.constant 0 : i32
    %c0_i32_0 = arith.constant 0 : i32
    %c0_i32_1 = arith.constant 0 : i32
    return %arg1, %c0_i32, %c0_i32_0 : i32, i32, i32
  }
  func.func @transform_7(%arg0: i32, %arg1: i32) -> (i32, i32, i32) {
    %c0_i32 = arith.constant 0 : i32
    %c0_i32_0 = arith.constant 0 : i32
    %c0_i32_1 = arith.constant 0 : i32
    return %arg1, %c0_i32, %c0_i32_0 : i32, i32, i32
  }
  func.func @transform_8(%arg0: i32, %arg1: i32) -> (i32, i32, i32) {
    %c0_i32 = arith.constant 0 : i32
    %c0_i32_0 = arith.constant 0 : i32
    %c0_i32_1 = arith.constant 0 : i32
    return %arg1, %c0_i32, %c0_i32_0 : i32, i32, i32
  }
  func.func @transform_9(%arg0: i32, %arg1: i32) -> (i32, i32, i32) {
    %c0_i32 = arith.constant 0 : i32
    %c0_i32_0 = arith.constant 0 : i32
    %c0_i32_1 = arith.constant 0 : i32
    return %arg1, %c0_i32, %c0_i32_0 : i32, i32, i32
  }
  func.func @transform_10(%arg0: i32, %arg1: i32) -> (i32, i32, i32) {
    %c0_i32 = arith.constant 0 : i32
    %c0_i32_0 = arith.constant 0 : i32
    %c0_i32_1 = arith.constant 0 : i32
    return %arg1, %c0_i32, %c0_i32_0 : i32, i32, i32
  }
  func.func @transform_11(%arg0: i32, %arg1: i32) -> (i32, i32, i32) {
    %c0_i32 = arith.constant 0 : i32
    %c0_i32_0 = arith.constant 0 : i32
    %c0_i32_1 = arith.constant 0 : i32
    return %arg1, %c0_i32, %c0_i32_0 : i32, i32, i32
  }
  func.func @transform_12(%arg0: i32, %arg1: i32) -> (i32, i32, i32) {
    %c0_i32 = arith.constant 0 : i32
    %c0_i32_0 = arith.constant 0 : i32
    %c0_i32_1 = arith.constant 0 : i32
    return %arg1, %c0_i32, %c0_i32_0 : i32, i32, i32
  }
  func.func @transform_13(%arg0: i32, %arg1: i32) -> (i32, i32, i32) {
    %c0_i32 = arith.constant 0 : i32
    %c0_i32_0 = arith.constant 0 : i32
    %c0_i32_1 = arith.constant 0 : i32
    return %arg1, %c0_i32, %c0_i32_0 : i32, i32, i32
  }
  func.func @transform_14(%arg0: i32, %arg1: i32) -> (i32, i32, i32) {
    %c0_i32 = arith.constant 0 : i32
    %c0_i32_0 = arith.constant 0 : i32
    %c0_i32_1 = arith.constant 0 : i32
    return %arg0, %c0_i32, %c0_i32_0 : i32, i32, i32
  }
}

</mosaic_0001>

<bundles_post_ra>
// kernel: tpu_custom_call.1
= control target key start
LH: loop header
LB: loop body
LE: loop exit
PB: predicated region body
PF: predicated region fallthrough
CT: control target
= control target key end

     0   :  { %s2562_s29 = smov 0   ;;  %s2564_s30 = smov 0   ;;  %s2960_s0 = inlined_call_operand.vmem [shape: f32[2,17,32], index: 0, kind: input, shape index: {}]   ;;  %s2961_s1 = inlined_call_operand.vmem [shape: f32[1,17,32], index: 1, kind: input, shape index: {}]   ;;  %s2962_s2 = inlined_call_operand.vmem [shape: f32[2,1,32], index: 2, kind: input, shape index: {}]   ;;  %s2963_s3 = inlined_call_operand.vmem [shape: f32[2,1,32], index: 3, kind: input, shape index: {}]   ;;  %s2964_s4 = inlined_call_operand.vmem [shape: f32[2,32,96], index: 4, kind: input, shape index: {}]   ;;  %s2965_s5 = inlined_call_operand.vmem [shape: f32[2,1,96], index: 5, kind: input, shape index: {}]   ;;  %s2966_s6 = inlined_call_operand.vmem [shape: f32[2,32,32], index: 6, kind: input, shape index: {}]   ;;  %s2967_s7 = inlined_call_operand.vmem [shape: f32[2,1,32], index: 7, kind: input, shape index: {}]   ;;  %s2968_s8 = inlined_call_operand.vmem [shape: f32[2,1,32], index: 8, kind: input, shape index: {}]   ;;  %s2969_s9 = inlined_call_operand.vmem [shape: f32[2,1,32], index: 9, kind: input, shape index: {}]   ;;  %s2970_s10 = inlined_call_operand.vmem [shape: f32[2,32,128], index: 10, kind: input, shape index: {}]   ;;  %s2971_s11 = inlined_call_operand.vmem [shape: f32[2,1,128], index: 11, kind: input, shape index: {}]   ;;  %s2972_s12 = inlined_call_operand.vmem [shape: f32[2,128,32], index: 12, kind: input, shape index: {}]   ;;  %s2973_s13 = inlined_call_operand.vmem [shape: f32[2,1,32], index: 13, kind: input, shape index: {}]   ;;  %s2974_s14 = inlined_call_operand.vmem [shape: f32[2,17,32], index: 14, kind: output, shape index: {}]  }
   0x1   :  { %2980 = sst [smem:[#allocation8_spill]] %s2960_s0  ;;  %s2566_s15 = smov 0  }
   0x2   :  { %2981 = sst [smem:[#allocation9_spill]] %s2961_s1  ;;  %s2568_s16 = smov 0  }
   0x3   :  { %2982 = sst [smem:[#allocation10_spill]] %s2963_s3  ;;  %s2570_s17 = smov 0  }
   0x4   :  { %2983 = sst [smem:[#allocation11_spill]] %s2964_s4 }
   0x5   :  { %2984 = sst [smem:[#allocation12_spill]] %s2966_s6 }
   0x6   :  { %2985 = sst [smem:[#allocation13_spill]] %s2974_s14 }
   0x7 LB: > { %2986 = sst [smem:[#allocation2_spill]] %s2459_s29  ;;  %s33_s18 = sadd.s32 1, %s2467_s15  ;;  %s2475_s17 = sphi %s2570_s17, %s24_s17   ;;  %s2471_s16 = sphi %s2568_s16, %s3010_s16   ;;  %s2467_s15 = sphi %s2566_s15, %s3009_s15   ;;  %s2463_s30 = sphi %s2564_s30, %s3008_s30   ;;  %s2459_s29 = sphi %s2562_s29, %s3007_s29  }
   0x8   : > { %2987 = sst [smem:[#allocation3_spill]] %s2467_s15  ;;  %s36_s19 = sadd.s32 1, %s2471_s16 }
   0x9   : > { %2988 = sst [smem:[#allocation4_spill]] %s2471_s16  ;;  %p34_p0 = scmp.ge.s32.totalorder %s33_s18, 2 }
   0xa   : > { %2989 = sst [smem:[#allocation5_spill]] %s2475_s17  ;;  %p1991_p1 = scmp.ge.s32.totalorder %s2475_s17, 1 }
   0xb   : > { %p528_p2 = scmp.lt.s32.totalorder %s2475_s17, 5  ;;  %s3012_s18 = smov (%p34_p0, %s33_s18), 0 }
   0xc   : > { %2990 = sst [smem:[#allocation6_spill]] %s3012_s18  ;;  %s3014_s19 = smov (!%p34_p0, %s36_s19), %s2471_s16 }
   0xd   : > { %p529_p3 = pnand %p1991_p1, %p528_p2  ;;  %p38_p4 = scmp.ge.s32.totalorder %s3014_s19, 2 }
   0xe   : > { %p618_p5 = scmp.lt.s32.totalorder (!%p529_p3), %s2463_s30, 1  ;;  %p623_p6 = scmp.lt.s32.totalorder (!%p529_p3), %s2459_s29, 1 }
   0xf   : > { %s3016_s19 = smov (%p38_p4, %s3014_s19), 0  ;;  %532 = sbr.rel (%p529_p3) target bundleno = 2648 (0xa58), region = 76 }
  0x10   : > { %2991 = sst [smem:[#allocation7_spill]] %s3016_s19  ;;  %s2993_s0 = sld [smem:[#allocation8_spill]] (!%p529_p3) }
  0x11   : > { %s2994_s4 = sld [smem:[#allocation11_spill]] (!%p529_p3)  ;;  %s2995_s6 = sld [smem:[#allocation12_spill]] (!%p529_p3) }
  0x16   : > { %s3018_s30 = smov (!%p618_p5, %s2463_s30), 1 }
  0x17   : > { %s2596_s20 = scalar_select %p623_p6, %s2459_s29, 1 }
  0x18   : > { %s2318_s21 = smul.u32 24, %s3018_s30 }
  0x19   : > { %s2042_s16 = sshll.u32 %s2596_s20, 5  ;;  %s658_s14 = scalar_lea.vmem %s2971_s11, %s2596_s20 }
  0x1a   : > { %s622_s18 = scalar_lea.vmem %s2993_s0, %s2318_s21  ;;  %s2613_s1 = scalar_lea.vmem %s2994_s4, %s2042_s16 }
  0x1b   : > { %s2622_s24 = scalar_lea.vmem %s2995_s6, %s2042_s16  ;;  %s2639_s30 = scalar_lea.vmem %s2970_s10, %s2042_s16 }
  0x1c   : > { %s2045_s6 = sshll.u32 %s2596_s20, 7  ;;  %s666_s19 = scalar_lea.vmem %s2973_s13, %s2596_s20 }
  0x1d   : > { %s2653_s0 = scalar_lea.vmem %s2972_s12, %s2045_s6  ;;  %s2996_s4 = sld [smem:[#allocation13_spill]] }
  0x1e   : > { %s2997_s16 = sld [smem:[#allocation2_spill]] }
  0x23   : > { %s2658_s3 = scalar_lea.vmem %s2996_s4, %s2318_s21 }
  0x24   : > { %p2002_p7 = scmp.ne.s32.totalorder %s2997_s16, 0 }
  0x25   : > { %v676_v0 = vld [vmem:[%s622_s18] sm:$0xff] (!%p2002_p7)  ;;  %s2998_s23 = sld [smem:[#allocation9_spill]] (!%p2002_p7)  ;;  %vm685_vm0 = vcmask (!%p2002_p7), 261120   ;;  %v677_v2 = vld [vmem:[%s622_s18 + $0x8] sm:$0xff] (!%p2002_p7)  ;;  %v678_v5 = vld [vmem:[%s622_s18 + $0x10] sm:$0x1] (!%p2002_p7) }
  0x26   : > { %675 = sbr.rel (%p2002_p7) target bundleno = 48 (0x30), region = 80  ;;  %vm688_vm1 = vcmask (!%p2002_p7), 253952  }
  0x2b   : > { %v679_v1 = vld [vmem:[%s2998_s23] sm:$0xff] (!%p2002_p7)  ;;  %v680_v4 = vld [vmem:[%s2998_s23 + $0x8] sm:$0xff] (!%p2002_p7)  ;;  %v681_v6 = vld [vmem:[%s2998_s23 + $0x10] sm:$0x1] (!%p2002_p7) }
  0x2c   : > { %v682_v3 = vadd.f32 (!%p2002_p7), %v679_v1, %v676_v0  ;;  %v683_v7 = vadd.f32 (!%p2002_p7), %v680_v4, %v677_v2  ;;  %v684_v8 = vadd.f32 (!%p2002_p7), %v681_v6, %v678_v5 }
  0x2e   : > { %686 = vst.msk [vmem:[%s2658_s3] sm:$0xff] %vm685_vm0, %v682_v3  ;;  %687 = vst.msk [vmem:[%s2658_s3 + $0x8] sm:$0xff] %vm685_vm0, %v683_v7 }
  0x2f   : > { %689 = vst.msk [vmem:[%s2658_s3 + $0x10] sm:$0x1] %vm688_vm1, %v684_v8 }
  0x30 PF: > { %vm695_vm2 = vcmask 261120   ;;  %vm702_vm3 = vcmask 253952   ;;  %v755_v30 = vld [vmem:[%s2613_s1] sm:$0xff]  ;;  %v756_v31 = vld [vmem:[%s2613_s1 + $0x8] sm:$0xff]  ;;  %v757_v32 = vld [vmem:[%s2613_s1 + $0x10] sm:$0xff]  ;;  %v2477_v33 = vmov 0.0|0.0   ;;  %s2999_s26 = scalar_lea.vmem %s2962_s2, %s2596_s20  ;;  %s3002_s22 = scalar_lea.vmem %s2965_s5, %s2596_s20 }
  0x31   : > { %2262 = vmatprep.subr.bf16.mxu0 %v2477_v33  ;;  %v2263_v34 = vpack.c.bf16 %v756_v31, %v755_v30  ;;  %v758_v35 = vld [vmem:[%s2613_s1 + $0x18] sm:$0xff]  ;;  %vm2478_vm4 = vmmov 0   ;;  %v2479_v36 = vmov 0.0   ;;  %2275 = vmatprep.subr.bf16.mxu1 %v2477_v33  ;;  %v2003_v48 = vld [vmem:[%s2999_s26] ss:$0 sm:$0xff]  ;;  %s3000_s15 = sld [smem:[#allocation10_spill]]  ;;  %s3003_s27 = scalar_lea.vmem %s2967_s7, %s2596_s20 }
  0x32   : > { %2118 = vmatprep.mubr.msk.f32.mxu0 %vm2478_vm4, %v2479_v36  ;;  %2163 = vmatprep.mubr.msk.f32.mxu1 %vm2478_vm4, %v2479_v36  ;;  %v2266_v37 = vpack.c.bf16 %v758_v35, %v757_v32  ;;  %v2005_v63 = vld [vmem:[%s3002_s22] ss:$0 sm:$0xff]  ;;  %s2480_s6 = smov 96   ;;  %s2481_s25 = smov 112   ;;  %vm867_vm5 = vcmask 130048   ;;  %vm963_vm7 = vcmask 138240  }
  0x33   : > { %2264 = vmatpush3.bf16.msra.mxu0 %v2263_v34  ;;  %s2482_s4 = smov 80   ;;  %vm2270_vm6 = vmpackc.low %vm867_vm5, %vm867_vm5  ;;  %vm970_vm8 = vcmask 131072   ;;  %s2483_s21 = smov 64   ;;  %vm1015_vm9 = vcmask 1040384  }
  0x34   : > { %2265 = vmatprep.subr.bf16.mxu0 %v2477_v33  ;;  %s2484_s1 = smov 48   ;;  %s2485_s18 = smov 16  }
  0x35   : > { %v2674_v9 = vld [vmem:[%s2658_s3] sm:$0xff]  ;;  %v2680_v11 = vld [vmem:[%s2658_s3 + $0x8] sm:$0xff]  ;;  %s3005_s29 = scalar_lea.vmem %s2969_s9, %s2596_s20 }
  0x36   : > { %v2677_v10 = vld [vmem:[%s2658_s3 + $0x10] sm:$0x1]  ;;  %v696_v12 = vsel %vm695_vm2, %v2674_v9, 0.0  ;;  %v699_v14 = vsel %vm695_vm2, %v2680_v11, 0.0 }
  0x37   : > { %v703_v13 = vsel %vm702_vm3, %v2677_v10, 0.0  ;;  %697 = vadd.xlane.f32.xlu0 %v696_v12  ;;  %2267 = vmatpush3.bf16.msra.mxu0 %v2266_v37  ;;  %s3001_s17 = scalar_lea.vmem %s3000_s15, %s2596_s20 }
  0x38   : > { %704 = vadd.xlane.f32.xlu1 %v703_v13  ;;  %2268 = vmatprep.subr.bf16.mxu0 %v2477_v33  ;;  %v2004_v50 = vld [vmem:[%s3001_s17] ss:$0 sm:$0xff] }
  0x3b   : > { %700 = vadd.xlane.f32.xlu0 %v699_v14 }
  0xc4   : > { %v698_v15 = vpop.xlane.xlu0 %697 }
  0xc5   : > { %v705_v16 = vpop.xlane.xlu1 %704  ;;  %v707_v17 = vmul.f32 0.03125, %v698_v15 }
  0xc6   : > { %v709_v18 = vmul.f32 0.03125, %v705_v16 }
  0xc7   : > { %v710_v19 = vsub.f32 %v2674_v9, %v707_v17 }
  0xc8   : > { %v712_v20 = vsub.f32 %v2677_v10, %v709_v18  ;;  %v701_v21 = vpop.xlane.xlu0 %700 }
  0xc9   : > { %v708_v22 = vmul.f32 0.03125, %v701_v21  ;;  %v713_v23 = vmul.f32 %v710_v19, %v710_v19 }
  0xca   : > { %v715_v24 = vmul.f32 %v712_v20, %v712_v20 }
  0xcb   : > { %v711_v25 = vsub.f32 %v2680_v11, %v708_v22  ;;  %v716_v26 = vsel %vm695_vm2, %v713_v23, 0.0 }
  0xcc   : > { %717 = vadd.xlane.f32.xlu1 %v716_v26  ;;  %v722_v27 = vsel %vm702_vm3, %v715_v24, 0.0 }
  0xcd   : > { %v714_v28 = vmul.f32 %v711_v25, %v711_v25 }
  0xcf   : > { %v719_v29 = vsel %vm695_vm2, %v714_v28, 0.0 }
  0xd0   : > { %723 = vadd.xlane.f32.xlu1 %v722_v27  ;;  %720 = vadd.xlane.f32.xlu0 %v719_v29 }
 0x159   : > { %v718_v38 = vpop.xlane.xlu1 %717 }
 0x15a   : > { %v725_v39 = vmul.f32 0.03125, %v718_v38 }
 0x15c   : > { %v728_v40 = vadd.f32 1e-05, %v725_v39 }
 0x15d   : > { %v724_v41 = vpop.xlane.xlu1 %723  ;;  %v721_v42 = vpop.xlane.xlu0 %720 }
 0x15e   : > { %2389 = vrsqrt.f32 %v728_v40  ;;  %v727_v43 = vmul.f32 0.03125, %v724_v41  ;;  %v726_v44 = vmul.f32 0.03125, %v721_v42 }
 0x160   : > { %v730_v45 = vadd.f32 1e-05, %v727_v43  ;;  %v729_v46 = vadd.f32 1e-05, %v726_v44 }
 0x162   : > { %2391 = vrsqrt.f32 %v730_v45 }
 0x163   : > { %2393 = vrsqrt.f32 %v729_v46 }
 0x168   : > { %v2390_v47 = vpop.eup %2389 }
 0x169   : > { %v734_v49 = vmul.f32 %v2390_v47, %v710_v19 }
 0x16b   : > { %v743_v51 = vmul.f32 %v2003_v48, %v734_v49 }
 0x16c   : > { %v2392_v52 = vpop.eup %2391 }
 0x16d   : > { %v2394_v53 = vpop.eup %2393  ;;  %v752_v54 = vadd.f32 %v2004_v50, %v743_v51  ;;  %v736_v56 = vmul.f32 %v2392_v52, %v712_v20 }
 0x16e   : > { %v735_v55 = vmul.f32 %v2394_v53, %v711_v25 }
 0x16f   : > { %2119 = vmatmul.mubr.msk.f32.vlgmr.msra.gmra.mrb[0].mxu0 %vm695_vm2, %v752_v54  ;;  %v745_v59 = vmul.f32 %v2003_v48, %v736_v56 }
 0x170   : > { %2121 = vmatprep.mubr.msk.f32.mxu0 %vm2478_vm4, %v2479_v36  ;;  %v744_v57 = vmul.f32 %v2003_v48, %v735_v55 }
 0x171   : > { %v754_v60 = vadd.f32 %v2004_v50, %v745_v59 }
 0x172   : > { %v753_v58 = vadd.f32 %v2004_v50, %v744_v57 }
 0x174   : > { %2122 = vmatmul.mubr.msk.f32.gmra.mrb[2].mxu0 %vm695_vm2, %v753_v58 }
 0x175   : > { %2124 = vmatprep.mubr.msk.f32.mxu0 %vm2478_vm4, %v2479_v36 }
 0x178   : > { %2125 = vmatmul.mubr.msk.f32.gmra.mrb[4].mxu0 %vm695_vm2, %v754_v60 }
 0x179   : > { %2133 = vmatprep.mubr.msk.f32.mxu0 %vm2478_vm4, %v2479_v36 }
 0x242   : > { %v841_v61 = vpop.f32.mrb[0].mxu0 }
 0x243   : > { %v2120_v62 = vpop.f32.mrb[1].mxu0  ;;  %v842_v1 = vadd.f32 %v2005_v63, %v841_v61 }
 0x245   : > { %v855_v8 = vmul.f32 0.25, %v842_v1 }
 0x247   : > { %v846_v0 = vpop.f32.mrb[2].mxu0 }
 0x248   : > { %v847_v2 = vadd.f32 %v2005_v63, %v846_v0  ;;  %v2123_v3 = vpop.f32.mrb[3].mxu0 }
 0x24a   : > { %v2730_v4 = vpack.i.bf16 %v847_v2, %v842_v1  ;;  %v856_v13 = vmul.f32 0.25, %v847_v2 }
 0x24b   : > { %v851_v5 = vpop.f32.mrb[4].mxu0 }
 0x24c   : > { %v2732_v6 = vadd.f32 %v2005_v63, %v851_v5  ;;  %2370 = vrot.lane.b32.xlu0 %v2730_v4, %s2480_s6  ;;  %v2126_v7 = vpop.f32.mrb[5].mxu0 }
 0x24e   : > { %865 = vrot.lane.b32.xlu1 %v2732_v6, %s2480_s6  ;;  %v857_v12 = vmul.f32 0.25, %v2732_v6 }
 0x250   : > { %1098 = vrot.lane.b32.xlu0 %v855_v8, %s2481_s25 }
 0x252   : > { %2375 = vrot.lane.b32.xlu1 %v2730_v4, %s2482_s4 }
 0x254   : > { %1102 = vrot.lane.b32.xlu0 %v857_v12, %s2481_s25 }
 0x256   : > { %1108 = vrot.lane.b32.xlu1 %v2732_v6, %s2482_s4 }
 0x25a   : > { %1100 = vrot.lane.b32.xlu1 %v856_v13, %s2481_s25 }
 0x2be   : > { %v2371_v14 = vpop.permute.xlu0 %2370 }
 0x2bf   : > { %v2373_v15 = vunpack.i.h.bf16 %v2371_v14  ;;  %v2372_v16 = vunpack.i.l.bf16 %v2371_v14 }
 0x2c0   : > { %v866_v17 = vpop.permute.xlu1 %865 }
 0x2c1   : > { %v2269_v18 = vpack.c.bf16 %v2373_v15, %v2372_v16 }
 0x2c2   : > { %v1099_v24 = vpop.permute.xlu0 %1098 }
 0x2c3   : > { %2271 = vmatpush3.bf16.xpose.msk.msra.mxu0 %vm2270_vm6, %v2269_v18 }
 0x2c4   : > { %v2376_v19 = vpop.permute.xlu1 %2375  ;;  %2131 = vmatprep.subr.mxu0 %v2479_v36 }
 0x2c5   : > { %v2378_v20 = vunpack.i.h.bf16 %v2376_v19  ;;  %v2377_v21 = vunpack.i.l.bf16 %v2376_v19 }
 0x2c6   : > { %v1103_v26 = vpop.permute.xlu0 %1102 }
 0x2c7   : > { %v2276_v22 = vpack.c.bf16 %v2378_v20, %v2377_v21 }
 0x2c8   : > { %v1109_v23 = vpop.permute.xlu1 %1108 }
 0x2c9   : > { %2278 = vmatpush3.bf16.xpose.msk.msra.mxu1 %vm2270_vm6, %v2276_v22 }
 0x2ca   : > { %2161 = vmatprep.subr.mxu1 %v2479_v36 }
 0x2cb   : > { %2132 = vmatpush3.xpose.msk.msra.mxu0 %vm867_vm5, %v866_v17 }
 0x2cc   : > { %2272 = vmatprep.subr.bf16.mxu0 %v2477_v33  ;;  %v1101_v25 = vpop.permute.xlu1 %1100 }
 0x2ce   : > { %2134 = vmatmul.mubr.msk.f32.vlgmr.msra.gmra.mrb[6].mxu0 %vm867_vm5, %v855_v8 }
 0x2cf   : > { %2136 = vmatprep.mubr.msk.f32.mxu0 %vm2478_vm4, %v2479_v36 }
 0x2d1   : > { %2162 = vmatpush3.xpose.msk.msra.mxu1 %vm867_vm5, %v1109_v23 }
 0x2d2   : > { %2137 = vmatmul.mubr.msk.f32.gmra.mrb[8].mxu0 %vm867_vm5, %v856_v13  ;;  %2282 = vmatprep.subr.bf16.mxu1 %v2477_v33 }
 0x2d3   : > { %2139 = vmatprep.mubr.msk.f32.mxu0 %vm2478_vm4, %v2479_v36 }
 0x2d4   : > { %2164 = vmatmul.mubr.msk.f32.vlgmr.msra.gmra.mrb[0].mxu1 %vm867_vm5, %v1099_v24 }
 0x2d5   : > { %2166 = vmatprep.mubr.msk.f32.mxu1 %vm2478_vm4, %v2479_v36 }
 0x2d6   : > { %2140 = vmatmul.mubr.msk.f32.gmra.mrb[10].mxu0 %vm867_vm5, %v857_v12 }
 0x2d7   : > { %2148 = vmatprep.mubr.msk.f32.mxu0 %vm2478_vm4, %v2479_v36 }
 0x2d8   : > { %2167 = vmatmul.mubr.msk.f32.gmra.mrb[2].mxu1 %vm867_vm5, %v1101_v25 }
 0x2d9   : > { %2169 = vmatprep.mubr.msk.f32.mxu1 %vm2478_vm4, %v2479_v36 }
 0x2dc   : > { %2170 = vmatmul.mubr.msk.f32.gmra.mrb[4].mxu1 %vm867_vm5, %v1103_v26 }
 0x2dd   : > { %2195 = vmatprep.mubr.msk.f32.mxu1 %vm2478_vm4, %v2479_v36 }
 0x3a1   : > { %v949_v27 = vpop.f32.mrb[6].mxu0 }
 0x3a2   : > { %v2135_v28 = vpop.f32.mrb[7].mxu0  ;;  %v964_v29 = vsel %vm963_vm7, %v949_v27, -inf }
 0x3a3   : > { %965 = vmax.xlane.f32.xlu1 %v964_v29 }
 0x3a5   : > { %v954_v30 = vpop.f32.mrb[8].mxu0 }
 0x3a6   : > { %v2138_v31 = vpop.f32.mrb[9].mxu0  ;;  %v967_v32 = vsel %vm963_vm7, %v954_v30, -inf }
 0x3a7   : > { %v1188_v34 = vpop.f32.mrb[0].mxu1  ;;  %968 = vmax.xlane.f32.xlu0 %v967_v32 }
 0x3a8   : > { %v2165_v35 = vpop.f32.mrb[1].mxu1  ;;  %v1202_v43 = vsel %vm963_vm7, %v1188_v34, -inf }
 0x3a9   : > { %v959_v37 = vpop.f32.mrb[10].mxu0 }
 0x3aa   : > { %v2141_v38 = vpop.f32.mrb[11].mxu0  ;;  %v971_v39 = vsel %vm970_vm8, %v959_v37, -inf }
 0x3ab   : > { %v1193_v40 = vpop.f32.mrb[2].mxu1  ;;  %972 = vmax.xlane.f32.xlu0 %v971_v39 }
 0x3ac   : > { %v2168_v41 = vpop.f32.mrb[3].mxu1  ;;  %v1205_v42 = vsel %vm963_vm7, %v1193_v40, -inf }
 0x3ad   : > { %1206 = vmax.xlane.f32.xlu1 %v1205_v42 }
 0x3af   : > { %v1198_v44 = vpop.f32.mrb[4].mxu1  ;;  %1203 = vmax.xlane.f32.xlu0 %v1202_v43 }
 0x3b0   : > { %v2171_v45 = vpop.f32.mrb[5].mxu1  ;;  %v1208_v46 = vsel %vm970_vm8, %v1198_v44, -inf }
 0x3b3   : > { %1209 = vmax.xlane.f32.xlu0 %v1208_v46  ;;  %v1349_v46 = vld [vmem:[%s2622_s24] sm:$0xff] }
 0x430   : > { %v966_v47 = vpop.xlane.xlu1 %965 }
 0x431   : > { %v974_v48 = vsub.f32 %v949_v27, %v966_v47  ;;  %v1350_v47 = vld [vmem:[%s2622_s24 + $0x8] sm:$0xff] }
 0x433   : > { %v977_v49 = vmul.f32 1.442695, %v974_v48  ;;  %v1351_v48 = vld [vmem:[%s2622_s24 + $0x10] sm:$0xff] }
 0x434   : > { %v969_v50 = vpop.xlane.xlu0 %968 }
 0x435   : > { %2395 = vpow2.f32 %v977_v49  ;;  %v975_v52 = vsub.f32 %v954_v30, %v969_v50  ;;  %v2283_v49 = vpack.c.bf16 %v1350_v47, %v1349_v46  ;;  %v1352_v50 = vld [vmem:[%s2622_s24 + $0x18] sm:$0xff] }
 0x437   : > { %v979_v56 = vmul.f32 1.442695, %v975_v52  ;;  %2284 = vmatpush3.bf16.msra.mxu1 %v2283_v49 }
 0x438   : > { %v973_v51 = vpop.xlane.xlu0 %972  ;;  %2285 = vmatprep.subr.bf16.mxu1 %v2477_v33 }
 0x439   : > { %v976_v1 = vsub.f32 %v959_v37, %v973_v51  ;;  %v2286_v51 = vpack.c.bf16 %v1352_v50, %v1351_v48 }
 0x43a   : > { %v1207_v63 = vpop.xlane.xlu1 %1206 }
 0x43b   : > { %v1212_v0 = vsub.f32 %v1193_v40, %v1207_v63  ;;  %v981_v5 = vmul.f32 1.442695, %v976_v1  ;;  %2287 = vmatpush3.bf16.msra.mxu1 %v2286_v51 }
 0x43c   : > { %v1204_v53 = vpop.xlane.xlu0 %1203  ;;  %2294 = vmatprep.subr.bf16.mxu1 %v2477_v33 }
 0x43d   : > { %v1211_v54 = vsub.f32 %v1188_v34, %v1204_v53  ;;  %v1216_v2 = vmul.f32 1.442695, %v1212_v0 }
 0x43f   : > { %v2396_v55 = vpop.eup %2395  ;;  %v1214_v57 = vmul.f32 1.442695, %v1211_v54 }
 0x440   : > { %v983_v58 = vsel %vm963_vm7, %v2396_v55, 0.0  ;;  %v1210_v3 = vpop.xlane.xlu0 %1209 }
 0x441   : > { %2397 = vpow2.f32 %v1214_v57  ;;  %984 = vadd.xlane.f32.xlu1 %v983_v58  ;;  %v1213_v7 = vsub.f32 %v1198_v44, %v1210_v3 }
 0x442   : > { %2399 = vpow2.f32 %v979_v56 }
 0x443   : > { %2401 = vpow2.f32 %v1216_v2  ;;  %v1218_v8 = vmul.f32 1.442695, %v1213_v7 }
 0x444   : > { %2403 = vpow2.f32 %v981_v5 }
 0x445   : > { %2405 = vpow2.f32 %v1218_v8  ;;  %v2029_v8 = vld [vmem:[%s3003_s27] ss:$0 sm:$0xff] }
 0x44b   : > { %v2772_v59 = vpop.eup %2397 }
 0x44c   : > { %v1220_v60 = vsel %vm963_vm7, %v2772_v59, 0.0  ;;  %v2400_v61 = vpop.eup %2399 }
 0x44d   : > { %1221 = vadd.xlane.f32.xlu0 %v1220_v60  ;;  %v986_v62 = vsel %vm963_vm7, %v2400_v61, 0.0  ;;  %v2402_v12 = vpop.eup %2401 }
 0x44e   : > { %v1223_v13 = vsel %vm963_vm7, %v2402_v12, 0.0  ;;  %v2404_v14 = vpop.eup %2403 }
 0x44f   : > { %v989_v15 = vsel %vm970_vm8, %v2404_v14, 0.0  ;;  %v2406_v16 = vpop.eup %2405 }
 0x450   : > { %v1226_v17 = vsel %vm970_vm8, %v2406_v16, 0.0 }
 0x451   : > { %987 = vadd.xlane.f32.xlu0 %v986_v62 }
 0x452   : > { %1002 = vrot.lane.b32.xlu1 %v2732_v6, %s2483_s21 }
 0x467   : > { %2380 = vrot.lane.b32.xlu0 %v2730_v4, %s2483_s21 }
 0x46b   : > { %1239 = vrot.lane.b32.xlu0 %v2732_v6, %s2484_s1 }
 0x476   : > { %1224 = vadd.xlane.f32.xlu1 %v1223_v13 }
 0x47a   : > { %990 = vadd.xlane.f32.xlu1 %v989_v15 }
 0x47e   : > { %1227 = vadd.xlane.f32.xlu1 %v1226_v17 }
 0x48f   : > { %2385 = vrot.lane.b32.xlu1 %v2730_v4, %s2484_s1 }
 0x4ce   : > { %v985_v18 = vpop.xlane.xlu1 %984 }
 0x4cf   : > { %2407 = vrcp.f32 %v985_v18 }
 0x4d2   : > { %v1003_v26 = vpop.permute.xlu1 %1002 }
 0x4d9   : > { %v2408_v24 = vpop.eup %2407 }
 0x4da   : > { %v1222_v19 = vpop.xlane.xlu0 %1221  ;;  %v995_v25 = vmul.f32 %v2408_v24, %v2396_v55 }
 0x4de   : > { %v988_v6 = vpop.xlane.xlu0 %987 }
 0x4df   : > { %2409 = vrcp.f32 %v988_v6 }
 0x4e2   : > { %v2381_v20 = vpop.permute.xlu0 %2380 }
 0x4e3   : > { %v2383_v21 = vunpack.i.h.bf16 %v2381_v20  ;;  %v2382_v22 = vunpack.i.l.bf16 %v2381_v20 }
 0x4e5   : > { %v2273_v23 = vpack.c.bf16 %v2383_v21, %v2382_v22 }
 0x4e6   : > { %v1240_v41 = vpop.permute.xlu0 %1239 }
 0x4e7   : > { %2274 = vmatpush3.bf16.msra.mxu0 %v2273_v23 }
 0x4e8   : > { %2146 = vmatprep.subr.mxu0 %v2479_v36 }
 0x4e9   : > { %v2410_v27 = vpop.eup %2409 }
 0x4ea   : > { %v996_v4 = vmul.f32 %v2410_v27, %v2400_v61 }
 0x4eb   : > { %2147 = vmatpush3.msk.msra.mxu0 %vm1015_vm9, %v1003_v26 }
 0x4ec   : > { %2149 = vmatmul.mubr.msk.f32.vlgmr.msra.gmra.mrb[12].mxu0 %vm963_vm7, %v995_v25  ;;  %2279 = vmatprep.subr.bf16.mxu0 %v2477_v33 }
 0x4ed   : > { %2151 = vmatprep.mubr.msk.f32.mxu0 %vm2478_vm4, %v2479_v36 }
 0x4f0   : > { %2152 = vmatmul.mubr.msk.f32.gmra.mrb[14].mxu0 %vm963_vm7, %v996_v4 }
 0x4f1   : > { %2154 = vmatprep.mubr.msk.f32.mxu0 %vm2478_vm4, %v2479_v36 }
 0x503   : > { %v1225_v28 = vpop.xlane.xlu1 %1224 }
 0x507   : > { %v991_v29 = vpop.xlane.xlu1 %990 }
 0x508   : > { %2411 = vrcp.f32 %v991_v29 }
 0x509   : > { %2413 = vrcp.f32 %v1222_v19 }
 0x50a   : > { %2415 = vrcp.f32 %v1225_v28 }
 0x50b   : > { %v1228_v30 = vpop.xlane.xlu1 %1227 }
 0x50c   : > { %2417 = vrcp.f32 %v1228_v30 }
 0x50f   : > { %v2386_v31 = vpop.permute.xlu1 %2385 }
 0x510   : > { %v2388_v32 = vunpack.i.h.bf16 %v2386_v31  ;;  %v2387_v34 = vunpack.i.l.bf16 %v2386_v31 }
 0x512   : > { %v2412_v35 = vpop.eup %2411  ;;  %v2280_v37 = vpack.c.bf16 %v2388_v32, %v2387_v34 }
 0x513   : > { %v997_v38 = vmul.f32 %v2412_v35, %v2404_v14  ;;  %v2414_v39 = vpop.eup %2413 }
 0x514   : > { %2281 = vmatpush3.bf16.msra.mxu0 %v2280_v37  ;;  %v1232_v40 = vmul.f32 %v2414_v39, %v2772_v59  ;;  %v2416_v42 = vpop.eup %2415  ;;  %v1511_v39 = vld [vmem:[%s2639_s30] sm:$0xff] }
 0x515   : > { %2155 = vmatmul.mubr.msk.f32.gmra.mrb[16].mxu0 %vm963_vm7, %v997_v38  ;;  %2176 = vmatprep.subr.mxu0 %v2479_v36  ;;  %v1233_v43 = vmul.f32 %v2416_v42, %v2402_v12  ;;  %v1513_v42 = vld [vmem:[%s2639_s30 + $0x10] sm:$0xff] }
 0x516   : > { %2178 = vmatprep.mubr.msk.f32.mxu0 %vm2478_vm4, %v2479_v36  ;;  %v2418_v44 = vpop.eup %2417 }
 0x517   : > { %v1234_v45 = vmul.f32 %v2418_v44, %v2406_v16 }
 0x518   : > { %2177 = vmatpush3.msk.msra.mxu0 %vm1015_vm9, %v1240_v41 }
 0x519   : > { %2179 = vmatmul.mubr.msk.f32.vlgmr.msra.gmra.mrb[18].mxu0 %vm963_vm7, %v1232_v40  ;;  %2288 = vmatprep.subr.bf16.mxu0 %v2477_v33  ;;  %v1512_v40 = vld [vmem:[%s2639_s30 + $0x8] sm:$0xff] }
 0x51a   : > { %2181 = vmatprep.mubr.msk.f32.mxu0 %vm2478_vm4, %v2479_v36  ;;  %v2289_v41 = vpack.c.bf16 %v1512_v40, %v1511_v39 }
 0x51c   : > { %2290 = vmatpush3.bf16.msra.mxu0 %v2289_v41 }
 0x51d   : > { %2182 = vmatmul.mubr.msk.f32.gmra.mrb[20].mxu0 %vm963_vm7, %v1233_v43  ;;  %2291 = vmatprep.subr.bf16.mxu0 %v2477_v33  ;;  %v1514_v43 = vld [vmem:[%s2639_s30 + $0x18] sm:$0xff]  ;;  %s3004_s30 = scalar_lea.vmem %s2968_s8, %s2596_s20 }
 0x51e   : > { %2184 = vmatprep.mubr.msk.f32.mxu0 %vm2478_vm4, %v2479_v36  ;;  %v2292_v44 = vpack.c.bf16 %v1514_v43, %v1513_v42 }
 0x520   : > { %2293 = vmatpush3.bf16.msra.mxu0 %v2292_v44 }
 0x521   : > { %2185 = vmatmul.mubr.msk.f32.gmra.mrb[22].mxu0 %vm963_vm7, %v1234_v45 }
 0x522   : > { %2212 = vmatprep.mubr.msk.f32.mxu0 %vm2478_vm4, %v2479_v36 }
 0x5bf   : > { %v1084_v52 = vpop.f32.mrb[12].mxu0 }
 0x5c0   : > { %v2150_v53 = vpop.f32.mrb[13].mxu0 }
 0x5c3   : > { %v1089_v54 = vpop.f32.mrb[14].mxu0 }
 0x5c4   : > { %v2153_v55 = vpop.f32.mrb[15].mxu0 }
 0x5c5   : > { %v2033_v55 = vld [vmem:[%s3004_s30] ss:$0 sm:$0xff] }
 0x5e8   : > { %v1094_v56 = vpop.f32.mrb[16].mxu0 }
 0x5e9   : > { %v2156_v57 = vpop.f32.mrb[17].mxu0 }
 0x5ea   : > { %v2034_v57 = vld [vmem:[%s3005_s29] ss:$0 sm:$0xff] }
 0x5ec   : > { %v1320_v58 = vpop.f32.mrb[18].mxu0 }
 0x5ed   : > { %1337 = vrot.lane.b32.xlu1 %v1320_v58, %s2485_s18  ;;  %v2180_v59 = vpop.f32.mrb[19].mxu0 }
 0x5f0   : > { %v1325_v60 = vpop.f32.mrb[20].mxu0 }
 0x5f1   : > { %1339 = vrot.lane.b32.xlu0 %v1325_v60, %s2485_s18  ;;  %v2183_v61 = vpop.f32.mrb[21].mxu0 }
 0x5f4   : > { %v1330_v62 = vpop.f32.mrb[22].mxu0 }
 0x5f5   : > { %1341 = vrot.lane.b32.xlu1 %v1330_v62, %s2485_s18  ;;  %v2186_v63 = vpop.f32.mrb[23].mxu0 }
 0x65f   : > { %v1338_v0 = vpop.permute.xlu1 %1337 }
 0x660   : > { %v1346_v1 = vsel %vm867_vm5, %v1084_v52, %v1338_v0 }
 0x661   : > { %2196 = vmatmul.mubr.msk.f32.vlgmr.msra.gmra.mrb[6].mxu1 %vm695_vm2, %v1346_v1 }
 0x662   : > { %2198 = vmatprep.mubr.msk.f32.mxu1 %vm2478_vm4, %v2479_v36 }
 0x663   : > { %v1340_v2 = vpop.permute.xlu0 %1339 }
 0x664   : > { %v1347_v3 = vsel %vm867_vm5, %v1089_v54, %v1340_v2 }
 0x665   : > { %2199 = vmatmul.mubr.msk.f32.gmra.mrb[8].mxu1 %vm695_vm2, %v1347_v3 }
 0x666   : > { %2201 = vmatprep.mubr.msk.f32.mxu1 %vm2478_vm4, %v2479_v36 }
 0x667   : > { %v1342_v5 = vpop.permute.xlu1 %1341 }
 0x668   : > { %v1348_v7 = vsel %vm867_vm5, %v1094_v56, %v1342_v5  ;;  %v1692_v5 = vld [vmem:[%s2653_s0] sm:$0xff] }
 0x669   : > { %2202 = vmatmul.mubr.msk.f32.gmra.mrb[10].mxu1 %vm695_vm2, %v1348_v7  ;;  %v1693_v7 = vld [vmem:[%s2653_s0 + $0x8] sm:$0xff] }
 0x66a   : > { %2253 = vmatprep.mubr.msk.f32.mxu1 %vm2478_vm4, %v2479_v36 }
 0x734   : > { %v1435_v12 = vpop.f32.mrb[6].mxu1 }
 0x735   : > { %v1436_v13 = vadd.f32 %v2029_v8, %v1435_v12  ;;  %v2197_v14 = vpop.f32.mrb[7].mxu1  ;;  %v1694_v12 = vld [vmem:[%s2653_s0 + $0x10] sm:$0xff] }
 0x737   : > { %v2833_v15 = vadd.f32 %v1436_v13, %v2674_v9  ;;  %v1695_v13 = vld [vmem:[%s2653_s0 + $0x18] sm:$0xff] }
 0x738   : > { %v1440_v16 = vpop.f32.mrb[8].mxu1  ;;  %v2298_v14 = vpack.c.bf16 %v1695_v13, %v1694_v12 }
 0x739   : > { %v1441_v17 = vadd.f32 %v2029_v8, %v1440_v16  ;;  %v2200_v18 = vpop.f32.mrb[9].mxu1  ;;  %v1454_v19 = vsel %vm695_vm2, %v2833_v15, 0.0  ;;  %v1696_v16 = vld [vmem:[%s2653_s0 + $0x20] sm:$0xff] }
 0x73a   : > { %1455 = vadd.xlane.f32.xlu0 %v1454_v19  ;;  %v1698_v19 = vld [vmem:[%s2653_s0 + $0x30] sm:$0xff] }
 0x73b   : > { %v2838_v6 = vadd.f32 %v1441_v17, %v2680_v11  ;;  %v1697_v17 = vld [vmem:[%s2653_s0 + $0x28] sm:$0xff] }
 0x73c   : > { %v1445_v20 = vpop.f32.mrb[10].mxu1  ;;  %v2301_v18 = vpack.c.bf16 %v1697_v17, %v1696_v16 }
 0x73d   : > { %v1446_v21 = vadd.f32 %v2029_v8, %v1445_v20  ;;  %v2203_v22 = vpop.f32.mrb[11].mxu1  ;;  %v1457_v23 = vsel %vm695_vm2, %v2838_v6, 0.0  ;;  %v2295_v8 = vpack.c.bf16 %v1693_v7, %v1692_v5  ;;  %v1699_v20 = vld [vmem:[%s2653_s0 + $0x38] sm:$0xff] }
 0x73e   : > { %1458 = vadd.xlane.f32.xlu1 %v1457_v23  ;;  %v1700_v22 = vld [vmem:[%s2653_s0 + $0x40] sm:$0xff]  ;;  %v1701_v23 = vld [vmem:[%s2653_s0 + $0x48] sm:$0xff] }
 0x73f   : > { %v2843_v9 = vadd.f32 %v1446_v21, %v2677_v10  ;;  %2296 = vmatpush3.bf16.msra.mxu1 %v2295_v8  ;;  %v2304_v21 = vpack.c.bf16 %v1699_v20, %v1698_v19 }
 0x740   : > { %2297 = vmatprep.subr.bf16.mxu1 %v2477_v33 }
 0x741   : > { %v1460_v24 = vsel %vm702_vm3, %v2843_v9, 0.0 }
 0x742   : > { %1461 = vadd.xlane.f32.xlu0 %v1460_v24  ;;  %v2307_v24 = vpack.c.bf16 %v1701_v23, %v1700_v22 }
 0x743   : > { %2299 = vmatpush3.bf16.msra.mxu1 %v2298_v14 }
 0x744   : > { %2300 = vmatprep.subr.bf16.mxu1 %v2477_v33 }
 0x747   : > { %2302 = vmatpush3.bf16.msra.mxu1 %v2301_v18 }
 0x748   : > { %2303 = vmatprep.subr.bf16.mxu1 %v2477_v33 }
 0x74b   : > { %2305 = vmatpush3.bf16.msra.mxu1 %v2304_v21 }
 0x74c   : > { %2306 = vmatprep.subr.bf16.mxu1 %v2477_v33 }
 0x74f   : > { %2308 = vmatpush3.bf16.msra.mxu1 %v2307_v24 }
 0x750   : > { %2309 = vmatprep.subr.bf16.mxu1 %v2477_v33 }
 0x7c7   : > { %v1456_v25 = vpop.xlane.xlu0 %1455 }
 0x7c8   : > { %v1463_v26 = vmul.f32 0.03125, %v1456_v25  ;;  %v1702_v25 = vld [vmem:[%s2653_s0 + $0x50] sm:$0xff] }
 0x7ca   : > { %v1466_v27 = vsub.f32 %v2833_v15, %v1463_v26  ;;  %v1703_v26 = vld [vmem:[%s2653_s0 + $0x58] sm:$0xff] }
 0x7cb   : > { %v1459_v11 = vpop.xlane.xlu1 %1458 }
 0x7cc   : > { %v1464_v4 = vmul.f32 0.03125, %v1459_v11  ;;  %v1469_v28 = vmul.f32 %v1466_v27, %v1466_v27  ;;  %v1704_v11 = vld [vmem:[%s2653_s0 + $0x60] sm:$0xff] }
 0x7ce   : > { %v1467_v29 = vsub.f32 %v2838_v6, %v1464_v4  ;;  %v1472_v30 = vsel %vm695_vm2, %v1469_v28, 0.0  ;;  %v1705_v4 = vld [vmem:[%s2653_s0 + $0x68] sm:$0xff] }
 0x7cf   : > { %1473 = vadd.xlane.f32.xlu0 %v1472_v30  ;;  %v1462_v10 = vpop.xlane.xlu0 %1461  ;;  %v2313_v28 = vpack.c.bf16 %v1705_v4, %v1704_v11  ;;  %v1707_v30 = vld [vmem:[%s2653_s0 + $0x78] sm:$0xff] }
 0x7d0   : > { %v1465_v31 = vmul.f32 0.03125, %v1462_v10  ;;  %v1470_v32 = vmul.f32 %v1467_v29, %v1467_v29 }
 0x7d2   : > { %v1468_v34 = vsub.f32 %v2843_v9, %v1465_v31  ;;  %v1475_v35 = vsel %vm695_vm2, %v1470_v32, 0.0  ;;  %v2035_v31 = vld [vmem:[%s658_s14] ss:$0 sm:$0xff] }
 0x7d3   : > { %1476 = vadd.xlane.f32.xlu0 %v1475_v35 }
 0x7d4   : > { %v1471_v37 = vmul.f32 %v1468_v34, %v1468_v34 }
 0x7d6   : > { %v1478_v38 = vsel %vm702_vm3, %v1471_v37, 0.0 }
 0x7d7   : > { %1479 = vadd.xlane.f32.xlu1 %v1478_v38 }
 0x85c   : > { %v1474_v45 = vpop.xlane.xlu0 %1473 }
 0x85d   : > { %v1481_v46 = vmul.f32 0.03125, %v1474_v45 }
 0x85f   : > { %v1484_v47 = vadd.f32 1e-05, %v1481_v46 }
 0x860   : > { %v1477_v48 = vpop.xlane.xlu0 %1476 }
 0x861   : > { %2419 = vrsqrt.f32 %v1484_v47  ;;  %v1482_v49 = vmul.f32 0.03125, %v1477_v48 }
 0x863   : > { %v1485_v50 = vadd.f32 1e-05, %v1482_v49 }
 0x864   : > { %v1480_v51 = vpop.xlane.xlu1 %1479 }
 0x865   : > { %2421 = vrsqrt.f32 %v1485_v50  ;;  %v1483_v52 = vmul.f32 0.03125, %v1480_v51 }
 0x867   : > { %v1486_v53 = vadd.f32 1e-05, %v1483_v52 }
 0x869   : > { %2423 = vrsqrt.f32 %v1486_v53 }
 0x86b   : > { %v2420_v54 = vpop.eup %2419 }
 0x86c   : > { %v1490_v56 = vmul.f32 %v2420_v54, %v1466_v27  ;;  %v2310_v27 = vpack.c.bf16 %v1703_v26, %v1702_v25 }
 0x86e   : > { %v1499_v58 = vmul.f32 %v2033_v55, %v1490_v56  ;;  %2311 = vmatpush3.bf16.msra.mxu1 %v2310_v27 }
 0x86f   : > { %v2422_v59 = vpop.eup %2421  ;;  %2312 = vmatprep.subr.bf16.mxu1 %v2477_v33 }
 0x870   : > { %v1508_v60 = vadd.f32 %v2034_v57, %v1499_v58  ;;  %v1491_v61 = vmul.f32 %v2422_v59, %v1467_v29  ;;  %v1706_v29 = vld [vmem:[%s2653_s0 + $0x70] sm:$0xff] }
 0x871   : > { %v2316_v10 = vpack.c.bf16 %v1707_v30, %v1706_v29 }
 0x872   : > { %2213 = vmatmul.mubr.msk.f32.vlgmr.msra.gmra.mrb[24].mxu0 %vm695_vm2, %v1508_v60  ;;  %v1500_v62 = vmul.f32 %v2033_v55, %v1491_v61  ;;  %2314 = vmatpush3.bf16.msra.mxu1 %v2313_v28 }
 0x873   : > { %v2424_v63 = vpop.eup %2423  ;;  %2215 = vmatprep.mubr.msk.f32.mxu0 %vm2478_vm4, %v2479_v36  ;;  %2315 = vmatprep.subr.bf16.mxu1 %v2477_v33 }
 0x874   : > { %v1509_v0 = vadd.f32 %v2034_v57, %v1500_v62  ;;  %v1492_v1 = vmul.f32 %v2424_v63, %v1468_v34 }
 0x876   : > { %2216 = vmatmul.mubr.msk.f32.gmra.mrb[26].mxu0 %vm695_vm2, %v1509_v0  ;;  %v1501_v2 = vmul.f32 %v2033_v55, %v1492_v1  ;;  %2317 = vmatpush3.bf16.msra.mxu1 %v2316_v10 }
 0x877   : > { %2218 = vmatprep.mubr.msk.f32.mxu0 %vm2478_vm4, %v2479_v36 }
 0x878   : > { %v1510_v3 = vadd.f32 %v2034_v57, %v1501_v2 }
 0x87a   : > { %2219 = vmatmul.mubr.msk.f32.gmra.mrb[28].mxu0 %vm695_vm2, %v1510_v3 }
 0x945   : > { %v1597_v32 = vpop.f32.mrb[24].mxu0 }
 0x946   : > { %v2903_v34 = vadd.f32 %v2035_v31, %v1597_v32  ;;  %v2214_v35 = vpop.f32.mrb[25].mxu0 }
 0x947   : > { %v2486_v35 = vmov -1.0  }
 0x948   : > { %v2906_v37 = vmul.f32 0.70710677, %v2903_v34 }
 0x949   : > { %v1602_v38 = vpop.f32.mrb[26].mxu0 }
 0x94a   : > { %v1623_v39 = vand.u32 2147483647, %v2906_v37  ;;  %v2909_v33 = vadd.f32 %v2035_v31, %v1602_v38  ;;  %v2217_v40 = vpop.f32.mrb[27].mxu0  ;;  %vm1617_vm10 = vcmp.ge.f32.partialorder %v2906_v37, 0.0 }
 0x94b   : > { %v1620_v38 = vsel %vm1617_vm10, 1.0, %v2486_v35 }
 0x94c   : > { %v1626_v41 = vmul.f32 0.3275911, %v1623_v39  ;;  %v2912_v42 = vmul.f32 0.70710677, %v2909_v33  ;;  %v1665_v53 = vsub.f32 0.0, %v1623_v39 }
 0x94d   : > { %v1607_v43 = vpop.f32.mrb[28].mxu0 }
 0x94e   : > { %v1629_v44 = vadd.f32 1.0, %v1626_v41  ;;  %v1624_v45 = vand.u32 2147483647, %v2912_v42  ;;  %v2220_v46 = vpop.f32.mrb[29].mxu0  ;;  %v2915_v47 = vadd.f32 %v2035_v31, %v1607_v43  ;;  %v1668_v56 = vmul.f32 %v1665_v53, %v1623_v39 }
 0x94f   : > { %vm1618_vm11 = vcmp.ge.f32.partialorder %v2912_v42, 0.0 }
 0x950   : > { %2425 = vrcp.f32 %v1629_v44  ;;  %v1627_v48 = vmul.f32 0.3275911, %v1624_v45  ;;  %v2918_v49 = vmul.f32 0.70710677, %v2915_v47  ;;  %v1666_v57 = vsub.f32 0.0, %v1624_v45 }
 0x951   : > { %v1671_v61 = vmul.f32 1.442695, %v1668_v56  ;;  %v1611_v44 = vmul.f32 0.5, %v2903_v34 }
 0x952   : > { %v1630_v50 = vadd.f32 1.0, %v1627_v48  ;;  %v1625_v51 = vand.u32 2147483647, %v2918_v49  ;;  %v1669_v62 = vmul.f32 %v1666_v57, %v1624_v45  ;;  %v1621_v48 = vsel %vm1618_vm11, 1.0, %v2486_v35 }
 0x953   : > { %vm1619_vm12 = vcmp.ge.f32.partialorder %v2918_v49, 0.0 }
 0x954   : > { %2427 = vrcp.f32 %v1630_v50  ;;  %v1628_v52 = vmul.f32 0.3275911, %v1625_v51  ;;  %v1667_v0 = vsub.f32 0.0, %v1625_v51  ;;  %v1673_v5 = vmul.f32 1.442695, %v1669_v62 }
 0x955   : > { %v1622_v34 = vsel %vm1619_vm12, 1.0, %v2486_v35 }
 0x956   : > { %v1631_v54 = vadd.f32 1.0, %v1628_v52  ;;  %v1670_v12 = vmul.f32 %v1667_v0, %v1625_v51 }
 0x958   : > { %2429 = vrcp.f32 %v1631_v54  ;;  %v1675_v20 = vmul.f32 1.442695, %v1670_v12  ;;  %v1612_v54 = vmul.f32 0.5, %v2909_v33  ;;  %v2039_v33 = vld [vmem:[%s666_s19] ss:$0 sm:$0xff] }
 0x959   : > { %2431 = vpow2.f32 %v1671_v61 }
 0x95a   : > { %v2426_v55 = vpop.eup %2425  ;;  %2433 = vpow2.f32 %v1673_v5 }
 0x95b   : > { %v1638_v58 = vmul.f32 1.0614054, %v2426_v55  ;;  %2435 = vpow2.f32 %v1675_v20 }
 0x95d   : > { %v1641_v59 = vadd.f32 -1.4531521, %v1638_v58  ;;  %v1613_v58 = vmul.f32 0.5, %v2915_v47 }
 0x95e   : > { %v2428_v60 = vpop.eup %2427 }
 0x95f   : > { %v1644_v63 = vmul.f32 %v2426_v55, %v1641_v59  ;;  %v1639_v1 = vmul.f32 1.0614054, %v2428_v60 }
 0x961   : > { %v1647_v2 = vadd.f32 1.4214138, %v1644_v63  ;;  %v1642_v3 = vadd.f32 -1.4531521, %v1639_v1 }
 0x962   : > { %v2430_v7 = vpop.eup %2429 }
 0x963   : > { %v1650_v8 = vmul.f32 %v2426_v55, %v1647_v2  ;;  %v1645_v13 = vmul.f32 %v2428_v60, %v1642_v3  ;;  %v1640_v14 = vmul.f32 1.0614054, %v2430_v7  ;;  %v2432_v11 = vpop.eup %2431 }
 0x964   : > { %v2434_v32 = vpop.eup %2433 }
 0x965   : > { %v1653_v16 = vadd.f32 -0.28449672, %v1650_v8  ;;  %v1648_v17 = vadd.f32 1.4214138, %v1645_v13  ;;  %v1643_v18 = vadd.f32 -1.4531521, %v1640_v14  ;;  %v2436_v50 = vpop.eup %2435 }
 0x967   : > { %v1656_v19 = vmul.f32 %v2426_v55, %v1653_v16  ;;  %v1651_v21 = vmul.f32 %v2428_v60, %v1648_v17  ;;  %v1646_v22 = vmul.f32 %v2430_v7, %v1643_v18 }
 0x969   : > { %v1659_v23 = vadd.f32 0.2548296, %v1656_v19  ;;  %v1654_v24 = vadd.f32 -0.28449672, %v1651_v21  ;;  %v1649_v25 = vadd.f32 1.4214138, %v1646_v22 }
 0x96b   : > { %v1662_v26 = vmul.f32 %v2426_v55, %v1659_v23  ;;  %v1657_v27 = vmul.f32 %v2428_v60, %v1654_v24  ;;  %v1652_v4 = vmul.f32 %v2430_v7, %v1649_v25 }
 0x96d   : > { %v1677_v28 = vmul.f32 %v2432_v11, %v1662_v26  ;;  %v1660_v29 = vadd.f32 0.2548296, %v1657_v27  ;;  %v1655_v30 = vadd.f32 -0.28449672, %v1652_v4 }
 0x96f   : > { %v1680_v10 = vsub.f32 1.0, %v1677_v28  ;;  %v1663_v31 = vmul.f32 %v2428_v60, %v1660_v29  ;;  %v1658_v39 = vmul.f32 %v2430_v7, %v1655_v30 }
 0x971   : > { %v1683_v40 = vmul.f32 %v1680_v10, %v1620_v38  ;;  %v1678_v41 = vmul.f32 %v2434_v32, %v1663_v31  ;;  %v1661_v43 = vadd.f32 0.2548296, %v1658_v39 }
 0x973   : > { %v1686_v45 = vadd.f32 1.0, %v1683_v40  ;;  %v1681_v46 = vsub.f32 1.0, %v1678_v41  ;;  %v1664_v37 = vmul.f32 %v2430_v7, %v1661_v43 }
 0x975   : > { %v1689_v51 = vmul.f32 %v1686_v45, %v1611_v44  ;;  %v1684_v52 = vmul.f32 %v1681_v46, %v1621_v48  ;;  %v1679_v53 = vmul.f32 %v2436_v50, %v1664_v37 }
 0x977   : > { %2254 = vmatmul.mubr.f32.vlgmr.msra.gmra.mrb[12].mxu1 %v1689_v51  ;;  %v1687_v55 = vadd.f32 1.0, %v1684_v52  ;;  %v1682_v42 = vsub.f32 1.0, %v1679_v53 }
 0x978   : > { %2256 = vmatprep.mubr.msk.f32.mxu1 %vm2478_vm4, %v2479_v36 }
 0x979   : > { %v1690_v56 = vmul.f32 %v1687_v55, %v1612_v54  ;;  %v1685_v57 = vmul.f32 %v1682_v42, %v1622_v34 }
 0x97b   : > { %2257 = vmatmul.mubr.f32.gmra.mrb[14].mxu1 %v1690_v56  ;;  %v1688_v49 = vadd.f32 1.0, %v1685_v57 }
 0x97c   : > { %2259 = vmatprep.mubr.msk.f32.mxu1 %vm2478_vm4, %v2479_v36 }
 0x97d   : > { %v1691_v59 = vmul.f32 %v1688_v49, %v1613_v58 }
 0x97f   : > { %2260 = vmatmul.mubr.f32.gmra.mrb[16].mxu1 %v1691_v59 }
 0xa4a   : > { %v1781_v60 = vpop.f32.mrb[12].mxu1 }
 0xa4b   : > { %v1782_v61 = vadd.f32 %v2039_v33, %v1781_v60  ;;  %v2255_v62 = vpop.f32.mrb[13].mxu1 }
 0xa4d   : > { %v1795_v63 = vadd.f32 %v1782_v61, %v2833_v15 }
 0xa4e   : > { %v1786_v0 = vpop.f32.mrb[14].mxu1 }
 0xa4f   : > { %1798 = vst.msk [vmem:[%s2658_s3] sm:$0xff] %vm695_vm2, %v1795_v63  ;;  %v1787_v47 = vadd.f32 %v2039_v33, %v1786_v0  ;;  %v2258_v1 = vpop.f32.mrb[15].mxu1 }
 0xa51   : > { %v1796_v36 = vadd.f32 %v1787_v47, %v2838_v6 }
 0xa52   : > { %v1791_v2 = vpop.f32.mrb[16].mxu1 }
 0xa53   : > { %1799 = vst.msk [vmem:[%s2658_s3 + $0x8] sm:$0xff] %vm695_vm2, %v1796_v36  ;;  %v1792_v3 = vadd.f32 %v2039_v33, %v1791_v2  ;;  %v2261_v5 = vpop.f32.mrb[17].mxu1 }
 0xa55   : > { %v1797_v7 = vadd.f32 %v1792_v3, %v2843_v9 }
 0xa57   : > { %1800 = vst.msk [vmem:[%s2658_s3 + $0x10] sm:$0x1] %vm702_vm3, %v1797_v7 }
 0xa58 PF: > { %s3006_s20 = sld [smem:[#allocation5_spill]]  ;;  %s3007_s29 = sld [smem:[#allocation3_spill]] }
 0xa59   : > { %s3008_s30 = sld [smem:[#allocation4_spill]]  ;;  %s3009_s15 = sld [smem:[#allocation6_spill]] }
 0xa5a   : > { %s3010_s16 = sld [smem:[#allocation7_spill]] }
 0xa5e   : > { %s24_s17 = sadd.s32 1, %s3006_s20  }
 0xa5f   : > { %p21_p8 = scmp.ge.s32.totalorder %s24_s17, 6  }
 0xa61   :  { %23 = sbr.rel (!%p21_p8) target bundleno = 7 (0x7), region = 146 }

</bundles_post_ra>
